<compile_context>
chip_gen: v6e
topology: v6e:2x2x1
jax: 0.10.0
libtpu: 0.0.40
codegen_flags: <defaults>
</compile_context>

<pallas_src>
import functools

import jax
import jax.numpy as jnp
from jax import lax
from jax.experimental import pallas as pl
from jax.experimental.pallas import tpu as pltpu

# ----- small synthetic configuration (shapes implied by the module) -----
B = 2                 # batch
N = 8                 # sequence length
D = 32                # hidden_dim == (synthetic) BERT embedding dim
S = 5                 # output_dim == num_labels == num_slots
PF = 64               # pf_dim (positionwise feedforward)
HS = max(D, 128)      # slot-attention MLP hidden dim (torch: max(dim, 128))
NUM_ITERS = 3         # slot attention iterations
EPS = 1e-8            # slot attention eps
LN_EPS = 1e-5         # torch LayerNorm default eps
PAD_ID = -100.0       # pad_id_token
VOCAB = 50

NEG_PAD = -1e10       # torch masked_fill value for pad tokens (reference)
NEG_XBATCH = -1e30    # cross-batch fill (underflows to exactly 0 in the softmax)

# ----- packed-weight slab layout (one input array, static in-kernel slices) -----
LANES = 128
assert 2 * D <= LANES and 4 * D <= LANES and HS <= LANES and PF <= LANES

MROW_WQ = 0                       # (D, D)   wq * D**-0.5
MROW_WKV = MROW_WQ + D            # (D, 2D)  [Wk | Wv]
MROW_WGRU = MROW_WKV + D          # (2D, 4D) block-structured fused GRU weight
MROW_MLP_W1 = MROW_WGRU + 2 * D   # (D, HS)
MROW_MLP_W2 = MROW_MLP_W1 + D     # (HS, D)
MROW_FC1 = MROW_MLP_W2 + HS       # (D, PF)
MROW_FC2 = MROW_FC1 + D           # (PF, D)
VEC_BASE = MROW_FC2 + PF          # row-vector region
VROW_MU = VEC_BASE + 0            # (D,)
VROW_LOGSIG = VEC_BASE + 1        # (D,)
VROW_BQ = VEC_BASE + 2            # (D,)   bq * D**-0.5
VROW_MLP_B2 = VEC_BASE + 3        # (D,)
VROW_FC2_B = VEC_BASE + 4         # (D,)
VROW_B_KV = VEC_BASE + 5          # (2D,)
VROW_FC1_B = VEC_BASE + 6         # (PF,)
VROW_B_GRU = VEC_BASE + 7         # (4D,)  [bih_r+bhh_r | bih_z+bhh_z | bih_n | bhh_n]
VROW_MLP_B1 = VEC_BASE + 8        # (HS,)
VROW_LN_G = VEC_BASE + 9          # 4 rows: norm_input, norm_slots, norm_pre_ff, ff_ln
VROW_LN_B = VEC_BASE + 13         # 4 rows
SLAB_ROWS = ((VEC_BASE + 17 + 7) // 8) * 8   # pad row count to a multiple of 8


def _layernorm(y, g, b):
    mu = jnp.mean(y, axis=-1, keepdims=True)
    var = jnp.mean((y - mu) ** 2, axis=-1, keepdims=True)
    return (y - mu) * lax.rsqrt(var + LN_EPS) * g + b


def _encoder_kernel(x_ref, noise_ref, valid_ref, slab_ref, out_ref, ucat_ref, *, bps):
    rows_n = bps * N            # stacked token rows
    rows_s = bps * S            # stacked slot rows

    x = x_ref[0]                # (rows_n, D)  "embedded" (stacked over batch)
    noise = noise_ref[0]        # (rows_s, D)  deterministic slot-init noise
    validb = valid_ref[...] > 0.5   # (1, rows_n) pad-validity (True = keep)

    # ---- carve parameters out of the single packed slab (static slices) ----
    wq = slab_ref[MROW_WQ:MROW_WQ + D, :D]                      # pre-scaled
    w_kv = slab_ref[MROW_WKV:MROW_WKV + D, :2 * D]
    w_gru = slab_ref[MROW_WGRU:MROW_WGRU + 2 * D, :4 * D]
    mlp_w1 = slab_ref[MROW_MLP_W1:MROW_MLP_W1 + D, :HS]
    mlp_w2 = slab_ref[MROW_MLP_W2:MROW_MLP_W2 + HS, :D]
    fc1_w = slab_ref[MROW_FC1:MROW_FC1 + D, :PF]
    fc2_w = slab_ref[MROW_FC2:MROW_FC2 + PF, :D]

    mu = slab_ref[VROW_MU:VROW_MU + 1, :D]
    logsig = slab_ref[VROW_LOGSIG:VROW_LOGSIG + 1, :D]
    bq = slab_ref[VROW_BQ:VROW_BQ + 1, :D]                      # pre-scaled
    mlp_b2 = slab_ref[VROW_MLP_B2:VROW_MLP_B2 + 1, :D]
    fc2_b = slab_ref[VROW_FC2_B:VROW_FC2_B + 1, :D]
    b_kv = slab_ref[VROW_B_KV:VROW_B_KV + 1, :2 * D]
    fc1_b = slab_ref[VROW_FC1_B:VROW_FC1_B + 1, :PF]
    b_gru = slab_ref[VROW_B_GRU:VROW_B_GRU + 1, :4 * D]
    mlp_b1 = slab_ref[VROW_MLP_B1:VROW_MLP_B1 + 1, :HS]
    lnI_g = slab_ref[VROW_LN_G + 0:VROW_LN_G + 1, :D]
    lnS_g = slab_ref[VROW_LN_G + 1:VROW_LN_G + 2, :D]
    lnF_g = slab_ref[VROW_LN_G + 2:VROW_LN_G + 3, :D]
    lnO_g = slab_ref[VROW_LN_G + 3:VROW_LN_G + 4, :D]
    lnI_b = slab_ref[VROW_LN_B + 0:VROW_LN_B + 1, :D]
    lnS_b = slab_ref[VROW_LN_B + 1:VROW_LN_B + 2, :D]
    lnF_b = slab_ref[VROW_LN_B + 2:VROW_LN_B + 3, :D]
    lnO_b = slab_ref[VROW_LN_B + 3:VROW_LN_B + 4, :D]

    # ---- loop-invariant mask constants (rebuilt in-kernel, no mask DMA) ----
    row_id = lax.broadcasted_iota(jnp.int32, (rows_s, rows_n), 0)
    col_id = lax.broadcasted_iota(jnp.int32, (rows_s, rows_n), 1)
    in_block = None
    for b in range(bps):   # bps is a small static int; comparisons only (no int div)
        blk = ((row_id >= b * S) & (row_id < (b + 1) * S) &
               (col_id >= b * N) & (col_id < (b + 1) * N))
        in_block = blk if in_block is None else (in_block | blk)
    keep = in_block & validb                           # valid same-batch entries
    fill = jnp.where(in_block, NEG_PAD, NEG_XBATCH)    # masked_fill values
    blockdiag = in_block.astype(jnp.float32)           # exact-zero cross batch

    # ---- loop-invariant bias / LN broadcasts (hoisted out of the unrolled loop) ----
    bq_b = jnp.broadcast_to(bq, (rows_s, D))
    b_gru_b = jnp.broadcast_to(b_gru, (rows_s, 4 * D))
    mlp_b1_b = jnp.broadcast_to(mlp_b1, (rows_s, HS))
    mlp_b2_b = jnp.broadcast_to(mlp_b2, (rows_s, D))
    lnS_g_b = jnp.broadcast_to(lnS_g, (rows_s, D))
    lnS_b_b = jnp.broadcast_to(lnS_b, (rows_s, D))
    lnF_g_b = jnp.broadcast_to(lnF_g, (rows_s, D))
    lnF_b_b = jnp.broadcast_to(lnF_b, (rows_s, D))

    # ---- slot attention: norm_input + fused K/V projection (one MXU push) ----
    x_n = _layernorm(x, lnI_g, lnI_b)
    kv = jnp.dot(x_n, w_kv, preferred_element_type=jnp.float32) + b_kv
    k = kv[:, :D]
    v = kv[:, D:]

    # slots = mu + exp(logsigma) * noise
    slots = mu + jnp.exp(logsig) * noise               # (rows_s, D)

    for _ in range(NUM_ITERS):
        slots_prev = slots
        s_n = _layernorm(slots, lnS_g_b, lnS_b_b)
        q = jnp.dot(s_n, wq, preferred_element_type=jnp.float32) + bq_b

        # dots = einsum('id,jd->ij', q, k); scale already folded into wq/bq
        dots = lax.dot_general(q, k, (((1,), (1,)), ((), ())),
                               preferred_element_type=jnp.float32)
        dots = jnp.where(keep, dots, fill)

        # softmax over the (stacked) slot axis (torch dim=1), then renormalize
        # over tokens.  Cross-batch rows underflow to exactly 0 and are zeroed
        # again after +eps, so each batch block matches per-batch execution.
        m = jnp.max(dots, axis=0, keepdims=True)
        e = jnp.exp(dots - m)
        attn = e / jnp.sum(e, axis=0, keepdims=True)
        attn = (attn + EPS) * blockdiag
        attn = attn / jnp.sum(attn, axis=-1, keepdims=True)

        # updates = einsum('jd,ij->id', v, attn)
        updates = jnp.dot(attn, v, preferred_element_type=jnp.float32)

        # GRUCell(updates, slots_prev): single fused K=2D, 128-lane-out matmul.
        # [updates | slots_prev] is staged through a tiny VMEM scratch with two
        # masked lane stores (avoids minor-dim concat lowering).
        ucat_ref[:, :D] = updates
        ucat_ref[:, D:] = slots_prev
        g = jnp.dot(ucat_ref[...], w_gru,
                    preferred_element_type=jnp.float32) + b_gru_b
        gr = jax.nn.sigmoid(g[:, :D])
        gz = jax.nn.sigmoid(g[:, D:2 * D])
        gn = jnp.tanh(g[:, 2 * D:3 * D] + gr * g[:, 3 * D:])
        slots = (1.0 - gz) * gn + gz * slots_prev

        # residual MLP: slots = slots + mlp(norm_pre_ff(slots))
        s_pre = _layernorm(slots, lnF_g_b, lnF_b_b)
        h = jnp.maximum(
            jnp.dot(s_pre, mlp_w1, preferred_element_type=jnp.float32) + mlp_b1_b,
            0.0)
        slots = slots + (
            jnp.dot(h, mlp_w2, preferred_element_type=jnp.float32) + mlp_b2_b)

    # ---- EncoderLayer (num_layer == 1): positionwise FF + final layer norm ----
    h = jnp.maximum(
        jnp.dot(slots, fc1_w, preferred_element_type=jnp.float32) + fc1_b, 0.0)
    ff = jnp.dot(h, fc2_w, preferred_element_type=jnp.float32) + fc2_b
    enc = _layernorm(slots + ff, lnO_g, lnO_b)          # (rows_s, D)

    # ---- fused NER head: output[b] = embedded[b] @ enc[b]^T, stored directly ----
    for b in range(bps):
        x_b = x[b * N:(b + 1) * N, :]                   # (N, D)
        e_b = enc[b * S:(b + 1) * S, :]                 # (S, D)
        out_ref[0, b * N:(b + 1) * N, :] = lax.dot_general(
            x_b, e_b, (((1,), (1,)), ((), ())),
            preferred_element_type=jnp.float32)


def _pack_weights(p):
    """Pack every weight / bias into one (SLAB_ROWS, 128) f32 slab."""
    scale = float(D) ** -0.5
    slab = jnp.zeros((SLAB_ROWS, LANES), jnp.float32)

    def put(s, row, a):
        a = jnp.asarray(a, jnp.float32)
        return s.at[row:row + a.shape[0], :a.shape[1]].set(a)

    # ---- matrices ----
    slab = put(slab, MROW_WQ, p["wq"] * scale)                     # scale folded
    slab = put(slab, MROW_WKV, jnp.concatenate([p["wk"], p["wv"]], axis=1))
    wih, whh = p["gru_wih"], p["gru_whh"]                          # (3, D, D) each
    w_gru = jnp.zeros((2 * D, 4 * D), jnp.float32)
    w_gru = w_gru.at[:D, 0:D].set(wih[0]).at[D:, 0:D].set(whh[0])          # r
    w_gru = w_gru.at[:D, D:2 * D].set(wih[1]).at[D:, D:2 * D].set(whh[1])  # z
    w_gru = w_gru.at[:D, 2 * D:3 * D].set(wih[2])                          # n (input)
    w_gru = w_gru.at[D:, 3 * D:4 * D].set(whh[2])                          # n (hidden)
    slab = put(slab, MROW_WGRU, w_gru)
    slab = put(slab, MROW_MLP_W1, p["mlp_w1"])
    slab = put(slab, MROW_MLP_W2, p["mlp_w2"])
    slab = put(slab, MROW_FC1, p["fc1_w"])
    slab = put(slab, MROW_FC2, p["fc2_w"])

    # ---- row vectors ----
    bih, bhh = p["gru_bih"], p["gru_bhh"]                          # (3, D) each
    b_gru = jnp.concatenate([bih[0] + bhh[0], bih[1] + bhh[1], bih[2], bhh[2]])
    slab = put(slab, VROW_MU, p["mu"])
    slab = put(slab, VROW_LOGSIG, p["logsigma"])
    slab = put(slab, VROW_BQ, p["bq"] * scale)                     # scale folded
    slab = put(slab, VROW_MLP_B2, p["mlp_b2"])
    slab = put(slab, VROW_FC2_B, p["fc2_b"])
    slab = put(slab, VROW_B_KV, jnp.concatenate([p["bk"], p["bv"]], axis=1))
    slab = put(slab, VROW_FC1_B, p["fc1_b"])
    slab = put(slab, VROW_B_GRU, b_gru[None, :])
    slab = put(slab, VROW_MLP_B1, p["mlp_b1"])
    slab = put(slab, VROW_LN_G, p["ln_g"])
    slab = put(slab, VROW_LN_B, p["ln_b"])
    return slab


def bertner_forward(input_ids, labels, params, noise):
    # --- plain-JAX glue: synthetic "BERT" embedding lookup ---
    embedded = params["emb_table"][input_ids]                      # (B, N, D)

    rows_n, rows_s = B * N, B * S

    # Encoder.make_src_mask compares the *embedded* tensor against pad_id and
    # takes feature 0, matching the reference module exactly.
    valid = (embedded[:, :, 0] != PAD_ID).astype(jnp.float32).reshape(1, rows_n)

    x_st = embedded.reshape(1, rows_n, D)
    noise_st = noise.reshape(1, rows_s, D)
    slab = _pack_weights(params)

    # grid = 1 on every generation (batch folded into the sublane dim): at this
    # size the kernel is latency-bound, so splitting across TensorCores only
    # duplicates weight DMAs and adds per-step overhead.
    out = pl.pallas_call(
        functools.partial(_encoder_kernel, bps=B),
        out_shape=jax.ShapeDtypeStruct((1, rows_n, S), jnp.float32),
        grid=(1,),
        in_specs=[
            pl.BlockSpec((1, rows_n, D), lambda g: (0, 0, 0)),     # embedded (stacked)
            pl.BlockSpec((1, rows_s, D), lambda g: (0, 0, 0)),     # slot-init noise
            pl.BlockSpec((1, rows_n), lambda g: (0, 0)),           # pad-validity row
            pl.BlockSpec((SLAB_ROWS, LANES), lambda g: (0, 0)),    # packed weights
        ],
        out_specs=pl.BlockSpec((1, rows_n, S), lambda g: (0, 0, 0)),
        scratch_shapes=[pltpu.VMEM((rows_s, 2 * D), jnp.float32)], # GRU concat staging
        compiler_params=pltpu.CompilerParams(
            dimension_semantics=("arbitrary",)),
    )(x_st, noise_st, valid, slab)

    output = out.reshape(B, N, S)                                  # (B, N, S)
    return output, labels


def make_params(key):
    ks = list(jax.random.split(key, 24))
    nrm = lambda k, shape, s=0.1: (s * jax.random.normal(k, shape)).astype(jnp.float32)
    p = {
        "emb_table": nrm(ks[0], (VOCAB, D), 1.0),
        "mu": nrm(ks[1], (1, D), 1.0),
        "logsigma": nrm(ks[2], (1, D), 0.05),
        "ln_g": jnp.ones((4, D), jnp.float32),
        "ln_b": jnp.zeros((4, D), jnp.float32),
        "wq": nrm(ks[3], (D, D)), "bq": nrm(ks[4], (1, D), 0.01),
        "wk": nrm(ks[5], (D, D)), "bk": nrm(ks[6], (1, D), 0.01),
        "wv": nrm(ks[7], (D, D)), "bv": nrm(ks[8], (1, D), 0.01),
        "gru_wih": nrm(ks[9], (3, D, D)), "gru_whh": nrm(ks[10], (3, D, D)),
        "gru_bih": nrm(ks[11], (3, D), 0.01), "gru_bhh": nrm(ks[12], (3, D), 0.01),
        "mlp_w1": nrm(ks[13], (D, HS)), "mlp_b1": nrm(ks[14], (1, HS), 0.01),
        "mlp_w2": nrm(ks[15], (HS, D)), "mlp_b2": nrm(ks[16], (1, D), 0.01),
        "fc1_w": nrm(ks[17], (D, PF)), "fc1_b": nrm(ks[18], (1, PF), 0.01),
        "fc2_w": nrm(ks[19], (PF, D)), "fc2_b": nrm(ks[20], (1, D), 0.01),
    }
    return p, ks[21], ks[22], ks[23]


if __name__ == "__main__":
    params, k_ids, k_lab, k_noise = make_params(jax.random.PRNGKey(0))

    input_ids = jax.random.randint(k_ids, (B, N), 0, VOCAB)
    labels = jax.random.randint(k_lab, (B, N), 0, S)
    # deterministic stand-in for torch.randn slot initialization
    noise = jax.random.normal(k_noise, (B, S, D), dtype=jnp.float32)

    output, labels_out = bertner_forward(input_ids, labels, params, noise)
    jax.block_until_ready(output)

    assert output.shape == (B, N, S) and labels_out.shape == (B, N)
    assert bool(jnp.all(jnp.isfinite(output)))
    print("KERNEL_OK")
</pallas_src>

<mosaic_0001>
module attributes {stable_mosaic.version = 11 : i64} {
  func.func @_encoder_kernel(%arg0: i32, %arg1: memref<1x16x32xf32, #tpu.memory_space<vmem>>, %arg2: memref<1x10x32xf32, #tpu.memory_space<vmem>>, %arg3: memref<1x16xf32, #tpu.memory_space<vmem>>, %arg4: memref<408x128xf32, #tpu.memory_space<vmem>>, %arg5: memref<1x16x5xf32, #tpu.memory_space<vmem>>, %arg6: memref<10x64xf32, #tpu.memory_space<vmem>>) attributes {dimension_semantics = [#tpu.dimension_semantics<arbitrary>], iteration_bounds = array<i64: 1>, scalar_prefetch = 0 : i64, scratch_operands = 1 : i64, tpu.core_type = #tpu.core_type<tc>, window_params = [{pipeline_mode = #tpu.pipeline_mode<synchronous>, transform_indices = @transform_0, window_bounds = array<i64: 1, 16, 32>}, {pipeline_mode = #tpu.pipeline_mode<synchronous>, transform_indices = @transform_1, window_bounds = array<i64: 1, 10, 32>}, {pipeline_mode = #tpu.pipeline_mode<synchronous>, transform_indices = @transform_2, window_bounds = array<i64: 1, 16>}, {pipeline_mode = #tpu.pipeline_mode<synchronous>, transform_indices = @transform_3, window_bounds = array<i64: 408, 128>}, {pipeline_mode = #tpu.pipeline_mode<synchronous>, transform_indices = @transform_4, window_bounds = array<i64: 1, 16, 5>}]} {
    %c0 = arith.constant 0 : index
    %c0_0 = arith.constant 0 : index
    %c0_1 = arith.constant 0 : index
    %0 = vector.load %arg1[%c0, %c0_0, %c0_1] : memref<1x16x32xf32, #tpu.memory_space<vmem>>, vector<1x16x32xf32>
    %1 = vector.shape_cast %0 : vector<1x16x32xf32> to vector<16x32xf32>
    %c0_2 = arith.constant 0 : index
    %c0_3 = arith.constant 0 : index
    %c0_4 = arith.constant 0 : index
    %2 = vector.load %arg2[%c0_2, %c0_3, %c0_4] : memref<1x10x32xf32, #tpu.memory_space<vmem>>, vector<1x10x32xf32>
    %3 = vector.shape_cast %2 : vector<1x10x32xf32> to vector<10x32xf32>
    %c0_5 = arith.constant 0 : index
    %c0_6 = arith.constant 0 : index
    %4 = vector.load %arg3[%c0_5, %c0_6] : memref<1x16xf32, #tpu.memory_space<vmem>>, vector<1x16xf32>
    %cst = arith.constant 5.000000e-01 : f32
    %5 = vector.broadcast %cst : f32 to vector<1x16xf32>
    %6 = arith.cmpf ogt, %4, %5 : vector<1x16xf32>
    %c0_7 = arith.constant 0 : index
    %c0_8 = arith.constant 0 : index
    %7 = vector.load %arg4[%c0_7, %c0_8] : memref<408x128xf32, #tpu.memory_space<vmem>>, vector<32x32xf32>
    %c32 = arith.constant 32 : index
    %c0_9 = arith.constant 0 : index
    %8 = vector.load %arg4[%c32, %c0_9] : memref<408x128xf32, #tpu.memory_space<vmem>>, vector<32x64xf32>
    %c64 = arith.constant 64 : index
    %c0_10 = arith.constant 0 : index
    %9 = vector.load %arg4[%c64, %c0_10] : memref<408x128xf32, #tpu.memory_space<vmem>>, vector<64x128xf32>
    %c128 = arith.constant 128 : index
    %c0_11 = arith.constant 0 : index
    %10 = vector.load %arg4[%c128, %c0_11] : memref<408x128xf32, #tpu.memory_space<vmem>>, vector<32x128xf32>
    %c160 = arith.constant 160 : index
    %c0_12 = arith.constant 0 : index
    %11 = vector.load %arg4[%c160, %c0_12] : memref<408x128xf32, #tpu.memory_space<vmem>>, vector<128x32xf32>
    %c288 = arith.constant 288 : index
    %c0_13 = arith.constant 0 : index
    %12 = vector.load %arg4[%c288, %c0_13] : memref<408x128xf32, #tpu.memory_space<vmem>>, vector<32x64xf32>
    %c320 = arith.constant 320 : index
    %c0_14 = arith.constant 0 : index
    %13 = vector.load %arg4[%c320, %c0_14] : memref<408x128xf32, #tpu.memory_space<vmem>>, vector<64x32xf32>
    %c384 = arith.constant 384 : index
    %c0_15 = arith.constant 0 : index
    %14 = vector.load %arg4[%c384, %c0_15] : memref<408x128xf32, #tpu.memory_space<vmem>>, vector<1x32xf32>
    %c385 = arith.constant 385 : index
    %c0_16 = arith.constant 0 : index
    %15 = vector.load %arg4[%c385, %c0_16] : memref<408x128xf32, #tpu.memory_space<vmem>>, vector<1x32xf32>
    %c386 = arith.constant 386 : index
    %c0_17 = arith.constant 0 : index
    %16 = vector.load %arg4[%c386, %c0_17] : memref<408x128xf32, #tpu.memory_space<vmem>>, vector<1x32xf32>
    %c387 = arith.constant 387 : index
    %c0_18 = arith.constant 0 : index
    %17 = vector.load %arg4[%c387, %c0_18] : memref<408x128xf32, #tpu.memory_space<vmem>>, vector<1x32xf32>
    %c388 = arith.constant 388 : index
    %c0_19 = arith.constant 0 : index
    %18 = vector.load %arg4[%c388, %c0_19] : memref<408x128xf32, #tpu.memory_space<vmem>>, vector<1x32xf32>
    %c389 = arith.constant 389 : index
    %c0_20 = arith.constant 0 : index
    %19 = vector.load %arg4[%c389, %c0_20] : memref<408x128xf32, #tpu.memory_space<vmem>>, vector<1x64xf32>
    %c390 = arith.constant 390 : index
    %c0_21 = arith.constant 0 : index
    %20 = vector.load %arg4[%c390, %c0_21] : memref<408x128xf32, #tpu.memory_space<vmem>>, vector<1x64xf32>
    %c391 = arith.constant 391 : index
    %c0_22 = arith.constant 0 : index
    %21 = vector.load %arg4[%c391, %c0_22] : memref<408x128xf32, #tpu.memory_space<vmem>>, vector<1x128xf32>
    %c392 = arith.constant 392 : index
    %c0_23 = arith.constant 0 : index
    %22 = vector.load %arg4[%c392, %c0_23] : memref<408x128xf32, #tpu.memory_space<vmem>>, vector<1x128xf32>
    %c393 = arith.constant 393 : index
    %c0_24 = arith.constant 0 : index
    %23 = vector.load %arg4[%c393, %c0_24] : memref<408x128xf32, #tpu.memory_space<vmem>>, vector<1x32xf32>
    %c394 = arith.constant 394 : index
    %c0_25 = arith.constant 0 : index
    %24 = vector.load %arg4[%c394, %c0_25] : memref<408x128xf32, #tpu.memory_space<vmem>>, vector<1x32xf32>
    %c395 = arith.constant 395 : index
    %c0_26 = arith.constant 0 : index
    %25 = vector.load %arg4[%c395, %c0_26] : memref<408x128xf32, #tpu.memory_space<vmem>>, vector<1x32xf32>
    %c396 = arith.constant 396 : index
    %c0_27 = arith.constant 0 : index
    %26 = vector.load %arg4[%c396, %c0_27] : memref<408x128xf32, #tpu.memory_space<vmem>>, vector<1x32xf32>
    %c397 = arith.constant 397 : index
    %c0_28 = arith.constant 0 : index
    %27 = vector.load %arg4[%c397, %c0_28] : memref<408x128xf32, #tpu.memory_space<vmem>>, vector<1x32xf32>
    %c398 = arith.constant 398 : index
    %c0_29 = arith.constant 0 : index
    %28 = vector.load %arg4[%c398, %c0_29] : memref<408x128xf32, #tpu.memory_space<vmem>>, vector<1x32xf32>
    %c399 = arith.constant 399 : index
    %c0_30 = arith.constant 0 : index
    %29 = vector.load %arg4[%c399, %c0_30] : memref<408x128xf32, #tpu.memory_space<vmem>>, vector<1x32xf32>
    %c400 = arith.constant 400 : index
    %c0_31 = arith.constant 0 : index
    %30 = vector.load %arg4[%c400, %c0_31] : memref<408x128xf32, #tpu.memory_space<vmem>>, vector<1x32xf32>
    %31 = tpu.iota {dimensions = array<i32: 0>} : vector<10x16xi32>
    %32 = tpu.iota {dimensions = array<i32: 1>} : vector<10x16xi32>
    %c0_i32 = arith.constant 0 : i32
    %33 = vector.broadcast %c0_i32 : i32 to vector<10x16xi32>
    %34 = arith.cmpi sge, %31, %33 : vector<10x16xi32>
    %c5_i32 = arith.constant 5 : i32
    %35 = vector.broadcast %c5_i32 : i32 to vector<10x16xi32>
    %36 = arith.cmpi slt, %31, %35 : vector<10x16xi32>
    %37 = arith.andi %34, %36 : vector<10x16xi1>
    %c0_i32_32 = arith.constant 0 : i32
    %38 = vector.broadcast %c0_i32_32 : i32 to vector<10x16xi32>
    %39 = arith.cmpi sge, %32, %38 : vector<10x16xi32>
    %40 = arith.andi %37, %39 : vector<10x16xi1>
    %c8_i32 = arith.constant 8 : i32
    %41 = vector.broadcast %c8_i32 : i32 to vector<10x16xi32>
    %42 = arith.cmpi slt, %32, %41 : vector<10x16xi32>
    %43 = arith.andi %40, %42 : vector<10x16xi1>
    %c5_i32_33 = arith.constant 5 : i32
    %44 = vector.broadcast %c5_i32_33 : i32 to vector<10x16xi32>
    %45 = arith.cmpi sge, %31, %44 : vector<10x16xi32>
    %c10_i32 = arith.constant 10 : i32
    %46 = vector.broadcast %c10_i32 : i32 to vector<10x16xi32>
    %47 = arith.cmpi slt, %31, %46 : vector<10x16xi32>
    %48 = arith.andi %45, %47 : vector<10x16xi1>
    %c8_i32_34 = arith.constant 8 : i32
    %49 = vector.broadcast %c8_i32_34 : i32 to vector<10x16xi32>
    %50 = arith.cmpi sge, %32, %49 : vector<10x16xi32>
    %51 = arith.andi %48, %50 : vector<10x16xi1>
    %c16_i32 = arith.constant 16 : i32
    %52 = vector.broadcast %c16_i32 : i32 to vector<10x16xi32>
    %53 = arith.cmpi slt, %32, %52 : vector<10x16xi32>
    %54 = arith.andi %51, %53 : vector<10x16xi1>
    %55 = arith.ori %43, %54 : vector<10x16xi1>
    %56 = vector.broadcast %6 : vector<1x16xi1> to vector<10x16xi1>
    %57 = arith.andi %55, %56 : vector<10x16xi1>
    %cst_35 = arith.constant -1.000000e+10 : f32
    %cst_36 = arith.constant -1.000000e+30 : f32
    %58 = vector.broadcast %cst_35 : f32 to vector<10x16xf32>
    %59 = vector.broadcast %cst_36 : f32 to vector<10x16xf32>
    %60 = arith.select %55, %58, %59 : vector<10x16xi1>, vector<10x16xf32>
    %61 = arith.extui %55 : vector<10x16xi1> to vector<10x16xi32>
    %62 = arith.sitofp %61 : vector<10x16xi32> to vector<10x16xf32>
    %63 = vector.shape_cast %16 : vector<1x32xf32> to vector<1x32xf32>
    %64 = vector.broadcast %63 : vector<1x32xf32> to vector<10x32xf32>
    %65 = vector.shape_cast %21 : vector<1x128xf32> to vector<1x128xf32>
    %66 = vector.broadcast %65 : vector<1x128xf32> to vector<10x128xf32>
    %67 = vector.shape_cast %22 : vector<1x128xf32> to vector<1x128xf32>
    %68 = vector.broadcast %67 : vector<1x128xf32> to vector<10x128xf32>
    %69 = vector.shape_cast %17 : vector<1x32xf32> to vector<1x32xf32>
    %70 = vector.broadcast %69 : vector<1x32xf32> to vector<10x32xf32>
    %71 = vector.shape_cast %24 : vector<1x32xf32> to vector<1x32xf32>
    %72 = vector.broadcast %71 : vector<1x32xf32> to vector<10x32xf32>
    %73 = vector.shape_cast %28 : vector<1x32xf32> to vector<1x32xf32>
    %74 = vector.broadcast %73 : vector<1x32xf32> to vector<10x32xf32>
    %75 = vector.shape_cast %25 : vector<1x32xf32> to vector<1x32xf32>
    %76 = vector.broadcast %75 : vector<1x32xf32> to vector<10x32xf32>
    %77 = vector.shape_cast %29 : vector<1x32xf32> to vector<1x32xf32>
    %78 = vector.broadcast %77 : vector<1x32xf32> to vector<10x32xf32>
    %cst_37 = arith.constant dense<0.000000e+00> : vector<16xf32>
    %79 = vector.multi_reduction <add>, %1, %cst_37 [1] : vector<16x32xf32> to vector<16xf32>
    %80 = vector.shape_cast %79 : vector<16xf32> to vector<16x1xf32>
    %cst_38 = arith.constant 3.200000e+01 : f32
    %81 = vector.broadcast %cst_38 : f32 to vector<16x1xf32>
    %82 = arith.divf %80, %81 : vector<16x1xf32>
    %83 = vector.broadcast %82 : vector<16x1xf32> to vector<16x32xf32>
    %84 = arith.subf %1, %83 : vector<16x32xf32>
    %85 = arith.mulf %84, %84 : vector<16x32xf32>
    %cst_39 = arith.constant dense<0.000000e+00> : vector<16xf32>
    %86 = vector.multi_reduction <add>, %85, %cst_39 [1] : vector<16x32xf32> to vector<16xf32>
    %87 = vector.shape_cast %86 : vector<16xf32> to vector<16x1xf32>
    %cst_40 = arith.constant 3.200000e+01 : f32
    %88 = vector.broadcast %cst_40 : f32 to vector<16x1xf32>
    %89 = arith.divf %87, %88 : vector<16x1xf32>
    %90 = vector.broadcast %82 : vector<16x1xf32> to vector<16x32xf32>
    %91 = arith.subf %1, %90 : vector<16x32xf32>
    %cst_41 = arith.constant 9.99999974E-6 : f32
    %92 = vector.broadcast %cst_41 : f32 to vector<16x1xf32>
    %93 = arith.addf %89, %92 : vector<16x1xf32>
    %94 = math.rsqrt %93 : vector<16x1xf32>
    %95 = vector.broadcast %94 : vector<16x1xf32> to vector<16x32xf32>
    %96 = arith.mulf %91, %95 : vector<16x32xf32>
    %97 = vector.broadcast %23 : vector<1x32xf32> to vector<16x32xf32>
    %98 = arith.mulf %96, %97 : vector<16x32xf32>
    %99 = vector.broadcast %27 : vector<1x32xf32> to vector<16x32xf32>
    %100 = arith.addf %98, %99 : vector<16x32xf32>
    %cst_42 = arith.constant dense<0.000000e+00> : vector<16x64xf32>
    %101 = tpu.matmul %100, %8, %cst_42 {dimension_numbers = #tpu.dot_dimension_numbers<[1], [0], [0], [1], [0, 0, 1, 1], [], []>} : vector<16x32xf32>, vector<32x64xf32>, vector<16x64xf32> -> vector<16x64xf32>
    %102 = vector.broadcast %19 : vector<1x64xf32> to vector<16x64xf32>
    %103 = arith.addf %101, %102 : vector<16x64xf32>
    %104 = vector.extract_strided_slice %103 {offsets = [0, 0], sizes = [16, 32], strides = [1, 1]} : vector<16x64xf32> to vector<16x32xf32>
    %105 = vector.extract_strided_slice %103 {offsets = [0, 32], sizes = [16, 32], strides = [1, 1]} : vector<16x64xf32> to vector<16x32xf32>
    %106 = math.exp %15 : vector<1x32xf32>
    %107 = vector.broadcast %106 : vector<1x32xf32> to vector<10x32xf32>
    %108 = arith.mulf %107, %3 : vector<10x32xf32>
    %109 = vector.broadcast %14 : vector<1x32xf32> to vector<10x32xf32>
    %110 = arith.addf %109, %108 : vector<10x32xf32>
    %cst_43 = arith.constant dense<0.000000e+00> : vector<10xf32>
    %111 = vector.multi_reduction <add>, %110, %cst_43 [1] : vector<10x32xf32> to vector<10xf32>
    %112 = vector.shape_cast %111 : vector<10xf32> to vector<10x1xf32>
    %cst_44 = arith.constant 3.200000e+01 : f32
    %113 = vector.broadcast %cst_44 : f32 to vector<10x1xf32>
    %114 = arith.divf %112, %113 : vector<10x1xf32>
    %115 = vector.broadcast %114 : vector<10x1xf32> to vector<10x32xf32>
    %116 = arith.subf %110, %115 : vector<10x32xf32>
    %117 = arith.mulf %116, %116 : vector<10x32xf32>
    %cst_45 = arith.constant dense<0.000000e+00> : vector<10xf32>
    %118 = vector.multi_reduction <add>, %117, %cst_45 [1] : vector<10x32xf32> to vector<10xf32>
    %119 = vector.shape_cast %118 : vector<10xf32> to vector<10x1xf32>
    %cst_46 = arith.constant 3.200000e+01 : f32
    %120 = vector.broadcast %cst_46 : f32 to vector<10x1xf32>
    %121 = arith.divf %119, %120 : vector<10x1xf32>
    %122 = vector.broadcast %114 : vector<10x1xf32> to vector<10x32xf32>
    %123 = arith.subf %110, %122 : vector<10x32xf32>
    %cst_47 = arith.constant 9.99999974E-6 : f32
    %124 = vector.broadcast %cst_47 : f32 to vector<10x1xf32>
    %125 = arith.addf %121, %124 : vector<10x1xf32>
    %126 = math.rsqrt %125 : vector<10x1xf32>
    %127 = vector.broadcast %126 : vector<10x1xf32> to vector<10x32xf32>
    %128 = arith.mulf %123, %127 : vector<10x32xf32>
    %129 = arith.mulf %128, %72 : vector<10x32xf32>
    %130 = arith.addf %129, %74 : vector<10x32xf32>
    %cst_48 = arith.constant dense<0.000000e+00> : vector<10x32xf32>
    %131 = tpu.matmul %130, %7, %cst_48 {dimension_numbers = #tpu.dot_dimension_numbers<[1], [0], [0], [1], [0, 0, 1, 1], [], []>} : vector<10x32xf32>, vector<32x32xf32>, vector<10x32xf32> -> vector<10x32xf32>
    %132 = arith.addf %131, %64 : vector<10x32xf32>
    %cst_49 = arith.constant dense<0.000000e+00> : vector<10x16xf32>
    %133 = tpu.matmul %132, %104, %cst_49 {dimension_numbers = #tpu.dot_dimension_numbers<[1], [1], [0], [0], [0, 0, 1, 0], [], []>} : vector<10x32xf32>, vector<16x32xf32>, vector<10x16xf32> -> vector<10x16xf32>
    %134 = arith.select %57, %133, %60 : vector<10x16xi1>, vector<10x16xf32>
    %cst_50 = arith.constant dense<0xFF800000> : vector<16xf32>
    %135 = vector.multi_reduction <maximumf>, %134, %cst_50 [0] : vector<10x16xf32> to vector<16xf32>
    %136 = vector.shape_cast %135 : vector<16xf32> to vector<1x16xf32>
    %137 = vector.broadcast %136 : vector<1x16xf32> to vector<10x16xf32>
    %138 = arith.subf %134, %137 : vector<10x16xf32>
    %139 = math.exp %138 : vector<10x16xf32>
    %cst_51 = arith.constant dense<0.000000e+00> : vector<16xf32>
    %140 = vector.multi_reduction <add>, %139, %cst_51 [0] : vector<10x16xf32> to vector<16xf32>
    %141 = vector.shape_cast %140 : vector<16xf32> to vector<1x16xf32>
    %142 = vector.broadcast %141 : vector<1x16xf32> to vector<10x16xf32>
    %143 = arith.divf %139, %142 : vector<10x16xf32>
    %cst_52 = arith.constant 9.99999993E-9 : f32
    %144 = vector.broadcast %cst_52 : f32 to vector<10x16xf32>
    %145 = arith.addf %143, %144 : vector<10x16xf32>
    %146 = arith.mulf %145, %62 : vector<10x16xf32>
    %cst_53 = arith.constant dense<0.000000e+00> : vector<10xf32>
    %147 = vector.multi_reduction <add>, %146, %cst_53 [1] : vector<10x16xf32> to vector<10xf32>
    %148 = vector.shape_cast %147 : vector<10xf32> to vector<10x1xf32>
    %149 = vector.broadcast %148 : vector<10x1xf32> to vector<10x16xf32>
    %150 = arith.divf %146, %149 : vector<10x16xf32>
    %cst_54 = arith.constant dense<0.000000e+00> : vector<10x32xf32>
    %151 = tpu.matmul %150, %105, %cst_54 {dimension_numbers = #tpu.dot_dimension_numbers<[1], [0], [0], [1], [0, 0, 1, 1], [], []>} : vector<10x16xf32>, vector<16x32xf32>, vector<10x32xf32> -> vector<10x32xf32>
    %c0_55 = arith.constant 0 : index
    %c0_56 = arith.constant 0 : index
    %152 = vector.load %arg6[%c0_55, %c0_56] : memref<10x64xf32, #tpu.memory_space<vmem>>, vector<10x32xf32>
    tpu.vector_store %arg6[%c0_55, %c0_56], %151 {strides = array<i32>} : memref<10x64xf32, #tpu.memory_space<vmem>>, vector<10x32xf32>,
    %c0_57 = arith.constant 0 : index
    %c32_58 = arith.constant 32 : index
    %153 = vector.load %arg6[%c0_57, %c32_58] : memref<10x64xf32, #tpu.memory_space<vmem>>, vector<10x32xf32>
    tpu.vector_store %arg6[%c0_57, %c32_58], %110 {strides = array<i32>} : memref<10x64xf32, #tpu.memory_space<vmem>>, vector<10x32xf32>,
    %c0_59 = arith.constant 0 : index
    %c0_60 = arith.constant 0 : index
    %154 = vector.load %arg6[%c0_59, %c0_60] : memref<10x64xf32, #tpu.memory_space<vmem>>, vector<10x64xf32>
    %cst_61 = arith.constant dense<0.000000e+00> : vector<10x128xf32>
    %155 = tpu.matmul %154, %9, %cst_61 {dimension_numbers = #tpu.dot_dimension_numbers<[1], [0], [0], [1], [0, 0, 1, 1], [], []>} : vector<10x64xf32>, vector<64x128xf32>, vector<10x128xf32> -> vector<10x128xf32>
    %156 = arith.addf %155, %66 : vector<10x128xf32>
    %157 = vector.extract_strided_slice %156 {offsets = [0, 0], sizes = [10, 32], strides = [1, 1]} : vector<10x128xf32> to vector<10x32xf32>
    %158 = arith.negf %157 : vector<10x32xf32>
    %159 = math.exp %158 : vector<10x32xf32>
    %cst_62 = arith.constant 1.000000e+00 : f32
    %160 = vector.broadcast %cst_62 : f32 to vector<10x32xf32>
    %161 = arith.addf %160, %159 : vector<10x32xf32>
    %162 = arith.divf %160, %161 : vector<10x32xf32>
    %163 = vector.extract_strided_slice %156 {offsets = [0, 32], sizes = [10, 32], strides = [1, 1]} : vector<10x128xf32> to vector<10x32xf32>
    %164 = arith.negf %163 : vector<10x32xf32>
    %165 = math.exp %164 : vector<10x32xf32>
    %cst_63 = arith.constant 1.000000e+00 : f32
    %166 = vector.broadcast %cst_63 : f32 to vector<10x32xf32>
    %167 = arith.addf %166, %165 : vector<10x32xf32>
    %168 = arith.divf %166, %167 : vector<10x32xf32>
    %169 = vector.extract_strided_slice %156 {offsets = [0, 64], sizes = [10, 32], strides = [1, 1]} : vector<10x128xf32> to vector<10x32xf32>
    %170 = vector.extract_strided_slice %156 {offsets = [0, 96], sizes = [10, 32], strides = [1, 1]} : vector<10x128xf32> to vector<10x32xf32>
    %171 = arith.mulf %162, %170 : vector<10x32xf32>
    %172 = arith.addf %169, %171 : vector<10x32xf32>
    %173 = math.tanh %172 : vector<10x32xf32>
    %cst_64 = arith.constant 1.000000e+00 : f32
    %174 = vector.broadcast %cst_64 : f32 to vector<10x32xf32>
    %175 = arith.subf %174, %168 : vector<10x32xf32>
    %176 = arith.mulf %175, %173 : vector<10x32xf32>
    %177 = arith.mulf %168, %110 : vector<10x32xf32>
    %178 = arith.addf %176, %177 : vector<10x32xf32>
    %cst_65 = arith.constant dense<0.000000e+00> : vector<10xf32>
    %179 = vector.multi_reduction <add>, %178, %cst_65 [1] : vector<10x32xf32> to vector<10xf32>
    %180 = vector.shape_cast %179 : vector<10xf32> to vector<10x1xf32>
    %cst_66 = arith.constant 3.200000e+01 : f32
    %181 = vector.broadcast %cst_66 : f32 to vector<10x1xf32>
    %182 = arith.divf %180, %181 : vector<10x1xf32>
    %183 = vector.broadcast %182 : vector<10x1xf32> to vector<10x32xf32>
    %184 = arith.subf %178, %183 : vector<10x32xf32>
    %185 = arith.mulf %184, %184 : vector<10x32xf32>
    %cst_67 = arith.constant dense<0.000000e+00> : vector<10xf32>
    %186 = vector.multi_reduction <add>, %185, %cst_67 [1] : vector<10x32xf32> to vector<10xf32>
    %187 = vector.shape_cast %186 : vector<10xf32> to vector<10x1xf32>
    %cst_68 = arith.constant 3.200000e+01 : f32
    %188 = vector.broadcast %cst_68 : f32 to vector<10x1xf32>
    %189 = arith.divf %187, %188 : vector<10x1xf32>
    %190 = vector.broadcast %182 : vector<10x1xf32> to vector<10x32xf32>
    %191 = arith.subf %178, %190 : vector<10x32xf32>
    %cst_69 = arith.constant 9.99999974E-6 : f32
    %192 = vector.broadcast %cst_69 : f32 to vector<10x1xf32>
    %193 = arith.addf %189, %192 : vector<10x1xf32>
    %194 = math.rsqrt %193 : vector<10x1xf32>
    %195 = vector.broadcast %194 : vector<10x1xf32> to vector<10x32xf32>
    %196 = arith.mulf %191, %195 : vector<10x32xf32>
    %197 = arith.mulf %196, %76 : vector<10x32xf32>
    %198 = arith.addf %197, %78 : vector<10x32xf32>
    %cst_70 = arith.constant dense<0.000000e+00> : vector<10x128xf32>
    %199 = tpu.matmul %198, %10, %cst_70 {dimension_numbers = #tpu.dot_dimension_numbers<[1], [0], [0], [1], [0, 0, 1, 1], [], []>} : vector<10x32xf32>, vector<32x128xf32>, vector<10x128xf32> -> vector<10x128xf32>
    %200 = arith.addf %199, %68 : vector<10x128xf32>
    %cst_71 = arith.constant 0.000000e+00 : f32
    %201 = vector.broadcast %cst_71 : f32 to vector<10x128xf32>
    %202 = arith.maximumf %200, %201 : vector<10x128xf32>
    %cst_72 = arith.constant dense<0.000000e+00> : vector<10x32xf32>
    %203 = tpu.matmul %202, %11, %cst_72 {dimension_numbers = #tpu.dot_dimension_numbers<[1], [0], [0], [1], [0, 0, 1, 1], [], []>} : vector<10x128xf32>, vector<128x32xf32>, vector<10x32xf32> -> vector<10x32xf32>
    %204 = arith.addf %203, %70 : vector<10x32xf32>
    %205 = arith.addf %178, %204 : vector<10x32xf32>
    %cst_73 = arith.constant dense<0.000000e+00> : vector<10xf32>
    %206 = vector.multi_reduction <add>, %205, %cst_73 [1] : vector<10x32xf32> to vector<10xf32>
    %207 = vector.shape_cast %206 : vector<10xf32> to vector<10x1xf32>
    %cst_74 = arith.constant 3.200000e+01 : f32
    %208 = vector.broadcast %cst_74 : f32 to vector<10x1xf32>
    %209 = arith.divf %207, %208 : vector<10x1xf32>
    %210 = vector.broadcast %209 : vector<10x1xf32> to vector<10x32xf32>
    %211 = arith.subf %205, %210 : vector<10x32xf32>
    %212 = arith.mulf %211, %211 : vector<10x32xf32>
    %cst_75 = arith.constant dense<0.000000e+00> : vector<10xf32>
    %213 = vector.multi_reduction <add>, %212, %cst_75 [1] : vector<10x32xf32> to vector<10xf32>
    %214 = vector.shape_cast %213 : vector<10xf32> to vector<10x1xf32>
    %cst_76 = arith.constant 3.200000e+01 : f32
    %215 = vector.broadcast %cst_76 : f32 to vector<10x1xf32>
    %216 = arith.divf %214, %215 : vector<10x1xf32>
    %217 = vector.broadcast %209 : vector<10x1xf32> to vector<10x32xf32>
    %218 = arith.subf %205, %217 : vector<10x32xf32>
    %cst_77 = arith.constant 9.99999974E-6 : f32
    %219 = vector.broadcast %cst_77 : f32 to vector<10x1xf32>
    %220 = arith.addf %216, %219 : vector<10x1xf32>
    %221 = math.rsqrt %220 : vector<10x1xf32>
    %222 = vector.broadcast %221 : vector<10x1xf32> to vector<10x32xf32>
    %223 = arith.mulf %218, %222 : vector<10x32xf32>
    %224 = arith.mulf %223, %72 : vector<10x32xf32>
    %225 = arith.addf %224, %74 : vector<10x32xf32>
    %cst_78 = arith.constant dense<0.000000e+00> : vector<10x32xf32>
    %226 = tpu.matmul %225, %7, %cst_78 {dimension_numbers = #tpu.dot_dimension_numbers<[1], [0], [0], [1], [0, 0, 1, 1], [], []>} : vector<10x32xf32>, vector<32x32xf32>, vector<10x32xf32> -> vector<10x32xf32>
    %227 = arith.addf %226, %64 : vector<10x32xf32>
    %cst_79 = arith.constant dense<0.000000e+00> : vector<10x16xf32>
    %228 = tpu.matmul %227, %104, %cst_79 {dimension_numbers = #tpu.dot_dimension_numbers<[1], [1], [0], [0], [0, 0, 1, 0], [], []>} : vector<10x32xf32>, vector<16x32xf32>, vector<10x16xf32> -> vector<10x16xf32>
    %229 = arith.select %57, %228, %60 : vector<10x16xi1>, vector<10x16xf32>
    %cst_80 = arith.constant dense<0xFF800000> : vector<16xf32>
    %230 = vector.multi_reduction <maximumf>, %229, %cst_80 [0] : vector<10x16xf32> to vector<16xf32>
    %231 = vector.shape_cast %230 : vector<16xf32> to vector<1x16xf32>
    %232 = vector.broadcast %231 : vector<1x16xf32> to vector<10x16xf32>
    %233 = arith.subf %229, %232 : vector<10x16xf32>
    %234 = math.exp %233 : vector<10x16xf32>
    %cst_81 = arith.constant dense<0.000000e+00> : vector<16xf32>
    %235 = vector.multi_reduction <add>, %234, %cst_81 [0] : vector<10x16xf32> to vector<16xf32>
    %236 = vector.shape_cast %235 : vector<16xf32> to vector<1x16xf32>
    %237 = vector.broadcast %236 : vector<1x16xf32> to vector<10x16xf32>
    %238 = arith.divf %234, %237 : vector<10x16xf32>
    %cst_82 = arith.constant 9.99999993E-9 : f32
    %239 = vector.broadcast %cst_82 : f32 to vector<10x16xf32>
    %240 = arith.addf %238, %239 : vector<10x16xf32>
    %241 = arith.mulf %240, %62 : vector<10x16xf32>
    %cst_83 = arith.constant dense<0.000000e+00> : vector<10xf32>
    %242 = vector.multi_reduction <add>, %241, %cst_83 [1] : vector<10x16xf32> to vector<10xf32>
    %243 = vector.shape_cast %242 : vector<10xf32> to vector<10x1xf32>
    %244 = vector.broadcast %243 : vector<10x1xf32> to vector<10x16xf32>
    %245 = arith.divf %241, %244 : vector<10x16xf32>
    %cst_84 = arith.constant dense<0.000000e+00> : vector<10x32xf32>
    %246 = tpu.matmul %245, %105, %cst_84 {dimension_numbers = #tpu.dot_dimension_numbers<[1], [0], [0], [1], [0, 0, 1, 1], [], []>} : vector<10x16xf32>, vector<16x32xf32>, vector<10x32xf32> -> vector<10x32xf32>
    %c0_85 = arith.constant 0 : index
    %c0_86 = arith.constant 0 : index
    %247 = vector.load %arg6[%c0_85, %c0_86] : memref<10x64xf32, #tpu.memory_space<vmem>>, vector<10x32xf32>
    tpu.vector_store %arg6[%c0_85, %c0_86], %246 {strides = array<i32>} : memref<10x64xf32, #tpu.memory_space<vmem>>, vector<10x32xf32>,
    %c0_87 = arith.constant 0 : index
    %c32_88 = arith.constant 32 : index
    %248 = vector.load %arg6[%c0_87, %c32_88] : memref<10x64xf32, #tpu.memory_space<vmem>>, vector<10x32xf32>
    tpu.vector_store %arg6[%c0_87, %c32_88], %205 {strides = array<i32>} : memref<10x64xf32, #tpu.memory_space<vmem>>, vector<10x32xf32>,
    %c0_89 = arith.constant 0 : index
    %c0_90 = arith.constant 0 : index
    %249 = vector.load %arg6[%c0_89, %c0_90] : memref<10x64xf32, #tpu.memory_space<vmem>>, vector<10x64xf32>
    %cst_91 = arith.constant dense<0.000000e+00> : vector<10x128xf32>
    %250 = tpu.matmul %249, %9, %cst_91 {dimension_numbers = #tpu.dot_dimension_numbers<[1], [0], [0], [1], [0, 0, 1, 1], [], []>} : vector<10x64xf32>, vector<64x128xf32>, vector<10x128xf32> -> vector<10x128xf32>
    %251 = arith.addf %250, %66 : vector<10x128xf32>
    %252 = vector.extract_strided_slice %251 {offsets = [0, 0], sizes = [10, 32], strides = [1, 1]} : vector<10x128xf32> to vector<10x32xf32>
    %253 = arith.negf %252 : vector<10x32xf32>
    %254 = math.exp %253 : vector<10x32xf32>
    %cst_92 = arith.constant 1.000000e+00 : f32
    %255 = vector.broadcast %cst_92 : f32 to vector<10x32xf32>
    %256 = arith.addf %255, %254 : vector<10x32xf32>
    %257 = arith.divf %255, %256 : vector<10x32xf32>
    %258 = vector.extract_strided_slice %251 {offsets = [0, 32], sizes = [10, 32], strides = [1, 1]} : vector<10x128xf32> to vector<10x32xf32>
    %259 = arith.negf %258 : vector<10x32xf32>
    %260 = math.exp %259 : vector<10x32xf32>
    %cst_93 = arith.constant 1.000000e+00 : f32
    %261 = vector.broadcast %cst_93 : f32 to vector<10x32xf32>
    %262 = arith.addf %261, %260 : vector<10x32xf32>
    %263 = arith.divf %261, %262 : vector<10x32xf32>
    %264 = vector.extract_strided_slice %251 {offsets = [0, 64], sizes = [10, 32], strides = [1, 1]} : vector<10x128xf32> to vector<10x32xf32>
    %265 = vector.extract_strided_slice %251 {offsets = [0, 96], sizes = [10, 32], strides = [1, 1]} : vector<10x128xf32> to vector<10x32xf32>
    %266 = arith.mulf %257, %265 : vector<10x32xf32>
    %267 = arith.addf %264, %266 : vector<10x32xf32>
    %268 = math.tanh %267 : vector<10x32xf32>
    %cst_94 = arith.constant 1.000000e+00 : f32
    %269 = vector.broadcast %cst_94 : f32 to vector<10x32xf32>
    %270 = arith.subf %269, %263 : vector<10x32xf32>
    %271 = arith.mulf %270, %268 : vector<10x32xf32>
    %272 = arith.mulf %263, %205 : vector<10x32xf32>
    %273 = arith.addf %271, %272 : vector<10x32xf32>
    %cst_95 = arith.constant dense<0.000000e+00> : vector<10xf32>
    %274 = vector.multi_reduction <add>, %273, %cst_95 [1] : vector<10x32xf32> to vector<10xf32>
    %275 = vector.shape_cast %274 : vector<10xf32> to vector<10x1xf32>
    %cst_96 = arith.constant 3.200000e+01 : f32
    %276 = vector.broadcast %cst_96 : f32 to vector<10x1xf32>
    %277 = arith.divf %275, %276 : vector<10x1xf32>
    %278 = vector.broadcast %277 : vector<10x1xf32> to vector<10x32xf32>
    %279 = arith.subf %273, %278 : vector<10x32xf32>
    %280 = arith.mulf %279, %279 : vector<10x32xf32>
    %cst_97 = arith.constant dense<0.000000e+00> : vector<10xf32>
    %281 = vector.multi_reduction <add>, %280, %cst_97 [1] : vector<10x32xf32> to vector<10xf32>
    %282 = vector.shape_cast %281 : vector<10xf32> to vector<10x1xf32>
    %cst_98 = arith.constant 3.200000e+01 : f32
    %283 = vector.broadcast %cst_98 : f32 to vector<10x1xf32>
    %284 = arith.divf %282, %283 : vector<10x1xf32>
    %285 = vector.broadcast %277 : vector<10x1xf32> to vector<10x32xf32>
    %286 = arith.subf %273, %285 : vector<10x32xf32>
    %cst_99 = arith.constant 9.99999974E-6 : f32
    %287 = vector.broadcast %cst_99 : f32 to vector<10x1xf32>
    %288 = arith.addf %284, %287 : vector<10x1xf32>
    %289 = math.rsqrt %288 : vector<10x1xf32>
    %290 = vector.broadcast %289 : vector<10x1xf32> to vector<10x32xf32>
    %291 = arith.mulf %286, %290 : vector<10x32xf32>
    %292 = arith.mulf %291, %76 : vector<10x32xf32>
    %293 = arith.addf %292, %78 : vector<10x32xf32>
    %cst_100 = arith.constant dense<0.000000e+00> : vector<10x128xf32>
    %294 = tpu.matmul %293, %10, %cst_100 {dimension_numbers = #tpu.dot_dimension_numbers<[1], [0], [0], [1], [0, 0, 1, 1], [], []>} : vector<10x32xf32>, vector<32x128xf32>, vector<10x128xf32> -> vector<10x128xf32>
    %295 = arith.addf %294, %68 : vector<10x128xf32>
    %cst_101 = arith.constant 0.000000e+00 : f32
    %296 = vector.broadcast %cst_101 : f32 to vector<10x128xf32>
    %297 = arith.maximumf %295, %296 : vector<10x128xf32>
    %cst_102 = arith.constant dense<0.000000e+00> : vector<10x32xf32>
    %298 = tpu.matmul %297, %11, %cst_102 {dimension_numbers = #tpu.dot_dimension_numbers<[1], [0], [0], [1], [0, 0, 1, 1], [], []>} : vector<10x128xf32>, vector<128x32xf32>, vector<10x32xf32> -> vector<10x32xf32>
    %299 = arith.addf %298, %70 : vector<10x32xf32>
    %300 = arith.addf %273, %299 : vector<10x32xf32>
    %cst_103 = arith.constant dense<0.000000e+00> : vector<10xf32>
    %301 = vector.multi_reduction <add>, %300, %cst_103 [1] : vector<10x32xf32> to vector<10xf32>
    %302 = vector.shape_cast %301 : vector<10xf32> to vector<10x1xf32>
    %cst_104 = arith.constant 3.200000e+01 : f32
    %303 = vector.broadcast %cst_104 : f32 to vector<10x1xf32>
    %304 = arith.divf %302, %303 : vector<10x1xf32>
    %305 = vector.broadcast %304 : vector<10x1xf32> to vector<10x32xf32>
    %306 = arith.subf %300, %305 : vector<10x32xf32>
    %307 = arith.mulf %306, %306 : vector<10x32xf32>
    %cst_105 = arith.constant dense<0.000000e+00> : vector<10xf32>
    %308 = vector.multi_reduction <add>, %307, %cst_105 [1] : vector<10x32xf32> to vector<10xf32>
    %309 = vector.shape_cast %308 : vector<10xf32> to vector<10x1xf32>
    %cst_106 = arith.constant 3.200000e+01 : f32
    %310 = vector.broadcast %cst_106 : f32 to vector<10x1xf32>
    %311 = arith.divf %309, %310 : vector<10x1xf32>
    %312 = vector.broadcast %304 : vector<10x1xf32> to vector<10x32xf32>
    %313 = arith.subf %300, %312 : vector<10x32xf32>
    %cst_107 = arith.constant 9.99999974E-6 : f32
    %314 = vector.broadcast %cst_107 : f32 to vector<10x1xf32>
    %315 = arith.addf %311, %314 : vector<10x1xf32>
    %316 = math.rsqrt %315 : vector<10x1xf32>
    %317 = vector.broadcast %316 : vector<10x1xf32> to vector<10x32xf32>
    %318 = arith.mulf %313, %317 : vector<10x32xf32>
    %319 = arith.mulf %318, %72 : vector<10x32xf32>
    %320 = arith.addf %319, %74 : vector<10x32xf32>
    %cst_108 = arith.constant dense<0.000000e+00> : vector<10x32xf32>
    %321 = tpu.matmul %320, %7, %cst_108 {dimension_numbers = #tpu.dot_dimension_numbers<[1], [0], [0], [1], [0, 0, 1, 1], [], []>} : vector<10x32xf32>, vector<32x32xf32>, vector<10x32xf32> -> vector<10x32xf32>
    %322 = arith.addf %321, %64 : vector<10x32xf32>
    %cst_109 = arith.constant dense<0.000000e+00> : vector<10x16xf32>
    %323 = tpu.matmul %322, %104, %cst_109 {dimension_numbers = #tpu.dot_dimension_numbers<[1], [1], [0], [0], [0, 0, 1, 0], [], []>} : vector<10x32xf32>, vector<16x32xf32>, vector<10x16xf32> -> vector<10x16xf32>
    %324 = arith.select %57, %323, %60 : vector<10x16xi1>, vector<10x16xf32>
    %cst_110 = arith.constant dense<0xFF800000> : vector<16xf32>
    %325 = vector.multi_reduction <maximumf>, %324, %cst_110 [0] : vector<10x16xf32> to vector<16xf32>
    %326 = vector.shape_cast %325 : vector<16xf32> to vector<1x16xf32>
    %327 = vector.broadcast %326 : vector<1x16xf32> to vector<10x16xf32>
    %328 = arith.subf %324, %327 : vector<10x16xf32>
    %329 = math.exp %328 : vector<10x16xf32>
    %cst_111 = arith.constant dense<0.000000e+00> : vector<16xf32>
    %330 = vector.multi_reduction <add>, %329, %cst_111 [0] : vector<10x16xf32> to vector<16xf32>
    %331 = vector.shape_cast %330 : vector<16xf32> to vector<1x16xf32>
    %332 = vector.broadcast %331 : vector<1x16xf32> to vector<10x16xf32>
    %333 = arith.divf %329, %332 : vector<10x16xf32>
    %cst_112 = arith.constant 9.99999993E-9 : f32
    %334 = vector.broadcast %cst_112 : f32 to vector<10x16xf32>
    %335 = arith.addf %333, %334 : vector<10x16xf32>
    %336 = arith.mulf %335, %62 : vector<10x16xf32>
    %cst_113 = arith.constant dense<0.000000e+00> : vector<10xf32>
    %337 = vector.multi_reduction <add>, %336, %cst_113 [1] : vector<10x16xf32> to vector<10xf32>
    %338 = vector.shape_cast %337 : vector<10xf32> to vector<10x1xf32>
    %339 = vector.broadcast %338 : vector<10x1xf32> to vector<10x16xf32>
    %340 = arith.divf %336, %339 : vector<10x16xf32>
    %cst_114 = arith.constant dense<0.000000e+00> : vector<10x32xf32>
    %341 = tpu.matmul %340, %105, %cst_114 {dimension_numbers = #tpu.dot_dimension_numbers<[1], [0], [0], [1], [0, 0, 1, 1], [], []>} : vector<10x16xf32>, vector<16x32xf32>, vector<10x32xf32> -> vector<10x32xf32>
    %c0_115 = arith.constant 0 : index
    %c0_116 = arith.constant 0 : index
    %342 = vector.load %arg6[%c0_115, %c0_116] : memref<10x64xf32, #tpu.memory_space<vmem>>, vector<10x32xf32>
    tpu.vector_store %arg6[%c0_115, %c0_116], %341 {strides = array<i32>} : memref<10x64xf32, #tpu.memory_space<vmem>>, vector<10x32xf32>,
    %c0_117 = arith.constant 0 : index
    %c32_118 = arith.constant 32 : index
    %343 = vector.load %arg6[%c0_117, %c32_118] : memref<10x64xf32, #tpu.memory_space<vmem>>, vector<10x32xf32>
    tpu.vector_store %arg6[%c0_117, %c32_118], %300 {strides = array<i32>} : memref<10x64xf32, #tpu.memory_space<vmem>>, vector<10x32xf32>,
    %c0_119 = arith.constant 0 : index
    %c0_120 = arith.constant 0 : index
    %344 = vector.load %arg6[%c0_119, %c0_120] : memref<10x64xf32, #tpu.memory_space<vmem>>, vector<10x64xf32>
    %cst_121 = arith.constant dense<0.000000e+00> : vector<10x128xf32>
    %345 = tpu.matmul %344, %9, %cst_121 {dimension_numbers = #tpu.dot_dimension_numbers<[1], [0], [0], [1], [0, 0, 1, 1], [], []>} : vector<10x64xf32>, vector<64x128xf32>, vector<10x128xf32> -> vector<10x128xf32>
    %346 = arith.addf %345, %66 : vector<10x128xf32>
    %347 = vector.extract_strided_slice %346 {offsets = [0, 0], sizes = [10, 32], strides = [1, 1]} : vector<10x128xf32> to vector<10x32xf32>
    %348 = arith.negf %347 : vector<10x32xf32>
    %349 = math.exp %348 : vector<10x32xf32>
    %cst_122 = arith.constant 1.000000e+00 : f32
    %350 = vector.broadcast %cst_122 : f32 to vector<10x32xf32>
    %351 = arith.addf %350, %349 : vector<10x32xf32>
    %352 = arith.divf %350, %351 : vector<10x32xf32>
    %353 = vector.extract_strided_slice %346 {offsets = [0, 32], sizes = [10, 32], strides = [1, 1]} : vector<10x128xf32> to vector<10x32xf32>
    %354 = arith.negf %353 : vector<10x32xf32>
    %355 = math.exp %354 : vector<10x32xf32>
    %cst_123 = arith.constant 1.000000e+00 : f32
    %356 = vector.broadcast %cst_123 : f32 to vector<10x32xf32>
    %357 = arith.addf %356, %355 : vector<10x32xf32>
    %358 = arith.divf %356, %357 : vector<10x32xf32>
    %359 = vector.extract_strided_slice %346 {offsets = [0, 64], sizes = [10, 32], strides = [1, 1]} : vector<10x128xf32> to vector<10x32xf32>
    %360 = vector.extract_strided_slice %346 {offsets = [0, 96], sizes = [10, 32], strides = [1, 1]} : vector<10x128xf32> to vector<10x32xf32>
    %361 = arith.mulf %352, %360 : vector<10x32xf32>
    %362 = arith.addf %359, %361 : vector<10x32xf32>
    %363 = math.tanh %362 : vector<10x32xf32>
    %cst_124 = arith.constant 1.000000e+00 : f32
    %364 = vector.broadcast %cst_124 : f32 to vector<10x32xf32>
    %365 = arith.subf %364, %358 : vector<10x32xf32>
    %366 = arith.mulf %365, %363 : vector<10x32xf32>
    %367 = arith.mulf %358, %300 : vector<10x32xf32>
    %368 = arith.addf %366, %367 : vector<10x32xf32>
    %cst_125 = arith.constant dense<0.000000e+00> : vector<10xf32>
    %369 = vector.multi_reduction <add>, %368, %cst_125 [1] : vector<10x32xf32> to vector<10xf32>
    %370 = vector.shape_cast %369 : vector<10xf32> to vector<10x1xf32>
    %cst_126 = arith.constant 3.200000e+01 : f32
    %371 = vector.broadcast %cst_126 : f32 to vector<10x1xf32>
    %372 = arith.divf %370, %371 : vector<10x1xf32>
    %373 = vector.broadcast %372 : vector<10x1xf32> to vector<10x32xf32>
    %374 = arith.subf %368, %373 : vector<10x32xf32>
    %375 = arith.mulf %374, %374 : vector<10x32xf32>
    %cst_127 = arith.constant dense<0.000000e+00> : vector<10xf32>
    %376 = vector.multi_reduction <add>, %375, %cst_127 [1] : vector<10x32xf32> to vector<10xf32>
    %377 = vector.shape_cast %376 : vector<10xf32> to vector<10x1xf32>
    %cst_128 = arith.constant 3.200000e+01 : f32
    %378 = vector.broadcast %cst_128 : f32 to vector<10x1xf32>
    %379 = arith.divf %377, %378 : vector<10x1xf32>
    %380 = vector.broadcast %372 : vector<10x1xf32> to vector<10x32xf32>
    %381 = arith.subf %368, %380 : vector<10x32xf32>
    %cst_129 = arith.constant 9.99999974E-6 : f32
    %382 = vector.broadcast %cst_129 : f32 to vector<10x1xf32>
    %383 = arith.addf %379, %382 : vector<10x1xf32>
    %384 = math.rsqrt %383 : vector<10x1xf32>
    %385 = vector.broadcast %384 : vector<10x1xf32> to vector<10x32xf32>
    %386 = arith.mulf %381, %385 : vector<10x32xf32>
    %387 = arith.mulf %386, %76 : vector<10x32xf32>
    %388 = arith.addf %387, %78 : vector<10x32xf32>
    %cst_130 = arith.constant dense<0.000000e+00> : vector<10x128xf32>
    %389 = tpu.matmul %388, %10, %cst_130 {dimension_numbers = #tpu.dot_dimension_numbers<[1], [0], [0], [1], [0, 0, 1, 1], [], []>} : vector<10x32xf32>, vector<32x128xf32>, vector<10x128xf32> -> vector<10x128xf32>
    %390 = arith.addf %389, %68 : vector<10x128xf32>
    %cst_131 = arith.constant 0.000000e+00 : f32
    %391 = vector.broadcast %cst_131 : f32 to vector<10x128xf32>
    %392 = arith.maximumf %390, %391 : vector<10x128xf32>
    %cst_132 = arith.constant dense<0.000000e+00> : vector<10x32xf32>
    %393 = tpu.matmul %392, %11, %cst_132 {dimension_numbers = #tpu.dot_dimension_numbers<[1], [0], [0], [1], [0, 0, 1, 1], [], []>} : vector<10x128xf32>, vector<128x32xf32>, vector<10x32xf32> -> vector<10x32xf32>
    %394 = arith.addf %393, %70 : vector<10x32xf32>
    %395 = arith.addf %368, %394 : vector<10x32xf32>
    %cst_133 = arith.constant dense<0.000000e+00> : vector<10x64xf32>
    %396 = tpu.matmul %395, %12, %cst_133 {dimension_numbers = #tpu.dot_dimension_numbers<[1], [0], [0], [1], [0, 0, 1, 1], [], []>} : vector<10x32xf32>, vector<32x64xf32>, vector<10x64xf32> -> vector<10x64xf32>
    %397 = vector.broadcast %20 : vector<1x64xf32> to vector<10x64xf32>
    %398 = arith.addf %396, %397 : vector<10x64xf32>
    %cst_134 = arith.constant 0.000000e+00 : f32
    %399 = vector.broadcast %cst_134 : f32 to vector<10x64xf32>
    %400 = arith.maximumf %398, %399 : vector<10x64xf32>
    %cst_135 = arith.constant dense<0.000000e+00> : vector<10x32xf32>
    %401 = tpu.matmul %400, %13, %cst_135 {dimension_numbers = #tpu.dot_dimension_numbers<[1], [0], [0], [1], [0, 0, 1, 1], [], []>} : vector<10x64xf32>, vector<64x32xf32>, vector<10x32xf32> -> vector<10x32xf32>
    %402 = vector.broadcast %18 : vector<1x32xf32> to vector<10x32xf32>
    %403 = arith.addf %401, %402 : vector<10x32xf32>
    %404 = arith.addf %395, %403 : vector<10x32xf32>
    %cst_136 = arith.constant dense<0.000000e+00> : vector<10xf32>
    %405 = vector.multi_reduction <add>, %404, %cst_136 [1] : vector<10x32xf32> to vector<10xf32>
    %406 = vector.shape_cast %405 : vector<10xf32> to vector<10x1xf32>
    %cst_137 = arith.constant 3.200000e+01 : f32
    %407 = vector.broadcast %cst_137 : f32 to vector<10x1xf32>
    %408 = arith.divf %406, %407 : vector<10x1xf32>
    %409 = vector.broadcast %408 : vector<10x1xf32> to vector<10x32xf32>
    %410 = arith.subf %404, %409 : vector<10x32xf32>
    %411 = arith.mulf %410, %410 : vector<10x32xf32>
    %cst_138 = arith.constant dense<0.000000e+00> : vector<10xf32>
    %412 = vector.multi_reduction <add>, %411, %cst_138 [1] : vector<10x32xf32> to vector<10xf32>
    %413 = vector.shape_cast %412 : vector<10xf32> to vector<10x1xf32>
    %cst_139 = arith.constant 3.200000e+01 : f32
    %414 = vector.broadcast %cst_139 : f32 to vector<10x1xf32>
    %415 = arith.divf %413, %414 : vector<10x1xf32>
    %416 = vector.broadcast %408 : vector<10x1xf32> to vector<10x32xf32>
    %417 = arith.subf %404, %416 : vector<10x32xf32>
    %cst_140 = arith.constant 9.99999974E-6 : f32
    %418 = vector.broadcast %cst_140 : f32 to vector<10x1xf32>
    %419 = arith.addf %415, %418 : vector<10x1xf32>
    %420 = math.rsqrt %419 : vector<10x1xf32>
    %421 = vector.broadcast %420 : vector<10x1xf32> to vector<10x32xf32>
    %422 = arith.mulf %417, %421 : vector<10x32xf32>
    %423 = vector.broadcast %26 : vector<1x32xf32> to vector<10x32xf32>
    %424 = arith.mulf %422, %423 : vector<10x32xf32>
    %425 = vector.broadcast %30 : vector<1x32xf32> to vector<10x32xf32>
    %426 = arith.addf %424, %425 : vector<10x32xf32>
    %427 = vector.extract_strided_slice %1 {offsets = [0, 0], sizes = [8, 32], strides = [1, 1]} : vector<16x32xf32> to vector<8x32xf32>
    %428 = vector.extract_strided_slice %426 {offsets = [0, 0], sizes = [5, 32], strides = [1, 1]} : vector<10x32xf32> to vector<5x32xf32>
    %cst_141 = arith.constant dense<0.000000e+00> : vector<8x5xf32>
    %429 = tpu.matmul %427, %428, %cst_141 {dimension_numbers = #tpu.dot_dimension_numbers<[1], [1], [0], [0], [0, 0, 1, 0], [], []>} : vector<8x32xf32>, vector<5x32xf32>, vector<8x5xf32> -> vector<8x5xf32>
    %c0_142 = arith.constant 0 : index
    %c0_143 = arith.constant 0 : index
    %c0_144 = arith.constant 0 : index
    %430 = vector.load %arg5[%c0_142, %c0_143, %c0_144] : memref<1x16x5xf32, #tpu.memory_space<vmem>>, vector<1x8x5xf32>
    %431 = vector.shape_cast %430 : vector<1x8x5xf32> to vector<8x5xf32>
    %432 = vector.shape_cast %429 : vector<8x5xf32> to vector<1x8x5xf32>
    tpu.vector_store %arg5[%c0_142, %c0_143, %c0_144], %432 {strides = array<i32>} : memref<1x16x5xf32, #tpu.memory_space<vmem>>, vector<1x8x5xf32>,
    %433 = vector.extract_strided_slice %1 {offsets = [8, 0], sizes = [8, 32], strides = [1, 1]} : vector<16x32xf32> to vector<8x32xf32>
    %434 = vector.extract_strided_slice %426 {offsets = [5, 0], sizes = [5, 32], strides = [1, 1]} : vector<10x32xf32> to vector<5x32xf32>
    %cst_145 = arith.constant dense<0.000000e+00> : vector<8x5xf32>
    %435 = tpu.matmul %433, %434, %cst_145 {dimension_numbers = #tpu.dot_dimension_numbers<[1], [1], [0], [0], [0, 0, 1, 0], [], []>} : vector<8x32xf32>, vector<5x32xf32>, vector<8x5xf32> -> vector<8x5xf32>
    %c0_146 = arith.constant 0 : index
    %c8 = arith.constant 8 : index
    %c0_147 = arith.constant 0 : index
    %436 = vector.load %arg5[%c0_146, %c8, %c0_147] : memref<1x16x5xf32, #tpu.memory_space<vmem>>, vector<1x8x5xf32>
    %437 = vector.shape_cast %436 : vector<1x8x5xf32> to vector<8x5xf32>
    %438 = vector.shape_cast %435 : vector<8x5xf32> to vector<1x8x5xf32>
    tpu.vector_store %arg5[%c0_146, %c8, %c0_147], %438 {strides = array<i32>} : memref<1x16x5xf32, #tpu.memory_space<vmem>>, vector<1x8x5xf32>,
    return
  }
  func.func @transform_0(%arg0: i32) -> (i32, i32, i32) {
    %c0_i32 = arith.constant 0 : i32
    %c0_i32_0 = arith.constant 0 : i32
    %c0_i32_1 = arith.constant 0 : i32
    %c0_i32_2 = arith.constant 0 : i32
    return %c0_i32, %c0_i32_0, %c0_i32_1 : i32, i32, i32
  }
  func.func @transform_1(%arg0: i32) -> (i32, i32, i32) {
    %c0_i32 = arith.constant 0 : i32
    %c0_i32_0 = arith.constant 0 : i32
    %c0_i32_1 = arith.constant 0 : i32
    %c0_i32_2 = arith.constant 0 : i32
    return %c0_i32, %c0_i32_0, %c0_i32_1 : i32, i32, i32
  }
  func.func @transform_2(%arg0: i32) -> (i32, i32) {
    %c0_i32 = arith.constant 0 : i32
    %c0_i32_0 = arith.constant 0 : i32
    %c0_i32_1 = arith.constant 0 : i32
    return %c0_i32, %c0_i32_0 : i32, i32
  }
  func.func @transform_3(%arg0: i32) -> (i32, i32) {
    %c0_i32 = arith.constant 0 : i32
    %c0_i32_0 = arith.constant 0 : i32
    %c0_i32_1 = arith.constant 0 : i32
    return %c0_i32, %c0_i32_0 : i32, i32
  }
  func.func @transform_4(%arg0: i32) -> (i32, i32, i32) {
    %c0_i32 = arith.constant 0 : i32
    %c0_i32_0 = arith.constant 0 : i32
    %c0_i32_1 = arith.constant 0 : i32
    %c0_i32_2 = arith.constant 0 : i32
    return %c0_i32, %c0_i32_0, %c0_i32_1 : i32, i32, i32
  }
}

</mosaic_0001>

<bundles_post_ra>
// kernel: tpu_custom_call.1
= control target key start
LH: loop header
LB: loop body
LE: loop exit
PB: predicated region body
PF: predicated region fallthrough
CT: control target
= control target key end

     0   :  { %9 = vsyncpa [#allocation4], 0  ;;  %s3543_s15 = smov [#allocation3]   ;;  %s4272_s0 = inlined_call_operand.vmem [shape: f32[1,16,32], index: 0, kind: input, shape index: {}]   ;;  %s4273_s1 = inlined_call_operand.vmem [shape: f32[1,10,32], index: 1, kind: input, shape index: {}]   ;;  %s4274_s2 = inlined_call_operand.vmem [shape: f32[1,16], index: 2, kind: input, shape index: {}]   ;;  %s4275_s3 = inlined_call_operand.hbm [shape: f32[408,128], index: 3, kind: input, shape index: {}]   ;;  %s4276_s4 = inlined_call_operand.vmem [shape: f32[1,16,5], index: 4, kind: output, shape index: {}]  }
   0x1   :  { %s21_s16 = sshll.u32 %s3543_s15, 4  ;;  %s22_s16 = int_to_ptr.vmem [resolvable:$true] %s21_s16 }
   0x2   :  { %s3529_s17 = scalar_lea.vmem %s22_s16, 6528  ;;  %p3534_p1 = scmp.lt.s32.totalorder %s22_s16, %s22_s16 }
   0x3   :  { %p3530_p0 = scmp.ne.s32.totalorder %s22_s16, %s3529_s17  ;;  %p3535_p2 = scmp.lt.s32.totalorder %s3529_s17, %s3529_s17 }
   0x5   :  { %p3536_p3 = por %p3535_p2, %p3534_p1 }
   0x7   :  { %p3537_p4 = pnand %p3536_p3, %p3530_p0 }
   0x9   :  { %3540 = shalt.err (!%p3537_p4)
}
   0xa   :  { %s3544_s18 = smov 128   ;;  %s3545_s19 = smov 8  }
   0xb   :  { %27 = dma.hbm_to_vmem [thread:$0]  %s4275_s3, 6528, %s22_s16, [#allocation4], %s3544_s18, %s3544_s18, %s3545_s19  }
   0xc   :  { %3541 = dma.done.wait [#allocation4], 6528  }
   0xd   :  { %3542 = vsyncadd [#allocation4], 4294960768  ;;  %vm179_vm0 = vcmask 261120   ;;  %v31_v0 = vld [vmem:[%s4272_s0] sm:$0xff]  ;;  %v32_v1 = vld [vmem:[%s4272_s0 + $0x8] sm:$0xff]  ;;  %v102_v6 = vlaneseq  ;;  %vm321_vm1 = vcmask 254976  }
   0xe   :  { %v180_v2 = vsel %vm179_vm0, %v31_v0, 0.0  ;;  %v86_v3 = vld [vmem:[#allocation3 + $0x181] sm:$0x1]  ;;  %v183_v5 = vsel %vm179_vm0, %v32_v1, 0.0  ;;  %v33_v10 = vld [vmem:[%s4273_s1] sm:$0xff]  ;;  %v44_v33 = vld [vmem:[#allocation3 + $0x38] sm:$0xff] }
   0xf   :  { %181 = vadd.xlane.f32.xlu0 %v180_v2  ;;  %v304_v4 = vmul.f32 1.442695, %v86_v3  ;;  %v3590_v7 = vshrl.u32 %v102_v6, 7  ;;  %v34_v11 = vld [vmem:[%s4273_s1 + $0x8] sm:$0x3]  ;;  %3069 = vmatprep.subr.mxu0 %v44_v33  ;;  %v43_v41 = vld [vmem:[#allocation3 + $0x30] sm:$0xff] }
  0x10   :  { %v2844_v13 = vld [vmem:[#allocation3 + $0x180] ss:$0 sm:$0xff]  ;;  %3070 = vmatpush3.msra.mxu0 %v44_v33  ;;  %v42_v42 = vld [vmem:[#allocation3 + $0x28] sm:$0xff]  ;;  %v3619_v44 = vld [vmem:[#allocation3 + $0x18] sm:$0xff]  ;;  %s3550_s30 = smov 32   ;;  %s3551_s5 = smov 64  }
  0x11   :  { %3400 = vpow2.f32 %v304_v4  ;;  %v136_v8 = vsub.s32 0, %v3590_v7  ;;  %3071 = vmatprep.subr.mxu0 %v43_v41  ;;  %v41_v43 = vld [vmem:[#allocation3 + $0x20] sm:$0xff]  ;;  %v3621_v45 = vld [vmem:[#allocation3 + $0x10] sm:$0xff]  ;;  %3080 = vmatprep.subr.mxu1 %v3619_v44  ;;  %v3625_v46 = vld [vmem:[#allocation3 + $0x8] sm:$0xff]  ;;  %v104_v33 = vadd.s32 8, %v3590_v7  ;;  %vm119_vm4 = vcmp.ge.s32.totalorder %v3590_v7, 5 }
  0x12   :  { %3072 = vmatpush3.msra.mxu0 %v43_v41  ;;  %3081 = vmatpush3.msra.mxu1 %v3619_v44  ;;  %v3631_v47 = vld [vmem:[#allocation3] sm:$0xff]  ;;  %v2839_v55 = vld [vmem:[#allocation3 + $0x189] ss:$0 sm:$0xff]  ;;  %v2840_v57 = vld [vmem:[#allocation3 + $0x18d] ss:$0 sm:$0xff]  ;;  %vm109_vm6 = vcmp.lt.s32.totalorder %v3590_v7, 5 }
  0x13   :  { %184 = vadd.xlane.f32.xlu0 %v183_v5  ;;  %3073 = vmatprep.subr.mxu0 %v42_v42  ;;  %vm122_vm5 = vcmp.lt.s32.totalorder %v104_v33, 10  ;;  %v3547_v7 = vmov -1e+30  }
  0x14   :  { %3074 = vmatpush3.msra.mxu0 %v42_v42  ;;  %3082 = vmatprep.subr.mxu1 %v3621_v45 }
  0x15   :  { %3075 = vmatprep.subr.mxu0 %v41_v43  ;;  %3083 = vmatpush3.msra.mxu1 %v3621_v45 }
  0x16   :  { %3076 = vmatpush3.msra.mxu0 %v41_v43  ;;  %3084 = vmatprep.subr.mxu1 %v3625_v46 }
  0x17   :  { %3085 = vmatpush3.msra.mxu1 %v3625_v46 }
  0x18   :  { %3086 = vmatprep.subr.mxu1 %v3631_v47 }
  0x19   :  { %3087 = vmatpush3.msra.mxu1 %v3631_v47 }
  0x1e   :  { %v3401_v9 = vpop.eup %3400 }
  0x1f   :  { %v309_v12 = vrot.slane %v3401_v9, %v136_v8 }
  0x21   :  { %v310_v14 = vmul.f32 %v309_v12, %v33_v10  ;;  %v311_v15 = vmul.f32 %v309_v12, %v34_v11  ;;  %v3637_v10 = vld [vmem:[#allocation3 + $0x18a] ss:$0 sm:$0xff]  ;;  %v3640_v12 = vld [vmem:[#allocation3 + $0x18e] ss:$0 sm:$0xff] }
  0x23   :  { %v3601_v16 = vadd.f32 %v2844_v13, %v310_v14  ;;  %v3603_v17 = vadd.f32 %v2844_v13, %v311_v15 }
  0x25   :  { %v318_v18 = vsel %vm179_vm0, %v3601_v16, 0.0  ;;  %v322_v19 = vsel %vm321_vm1, %v3603_v17, 0.0 }
  0x26   :  { %319 = vadd.xlane.f32.xlu1 %v318_v18 }
  0x2a   :  { %323 = vadd.xlane.f32.xlu1 %v322_v19 }
  0x98   :  { %v182_v20 = vpop.xlane.xlu0 %181 }
  0x99   :  { %v187_v21 = vmul.f32 0.03125, %v182_v20 }
  0x9b   :  { %v189_v22 = vsub.f32 %v31_v0, %v187_v21  ;;  %v2841_v21 = vld [vmem:[#allocation3 + $0x185] ss:$0 sm:$0xff] }
  0x9c   :  { %v185_v23 = vpop.xlane.xlu0 %184 }
  0x9d   :  { %v188_v24 = vmul.f32 0.03125, %v185_v23  ;;  %v191_v25 = vmul.f32 %v189_v22, %v189_v22 }
  0x9f   :  { %v190_v26 = vsub.f32 %v32_v1, %v188_v24  ;;  %v193_v27 = vsel %vm179_vm0, %v191_v25, 0.0 }
  0xa0   :  { %194 = vadd.xlane.f32.xlu0 %v193_v27  ;;  %v3660_v27 = vld [vmem:[#allocation3 + $0x182] ss:$0 sm:$0xff] }
  0xa1   :  { %v192_v28 = vmul.f32 %v190_v26, %v190_v26 }
  0xa3   :  { %v196_v29 = vsel %vm179_vm0, %v192_v28, 0.0 }
  0xa4   :  { %197 = vadd.xlane.f32.xlu1 %v196_v29 }
  0xaf   :  { %v320_v30 = vpop.xlane.xlu1 %319 }
  0xb0   :  { %v325_v31 = vmul.f32 0.03125, %v320_v30 }
  0xb2   :  { %v3612_v32 = vsub.f32 %v3601_v16, %v325_v31  ;;  %v35_v31 = vld [vmem:[%s4274_s2] sm:$0x1]  ;;  %s3549_s2 = smov 96  }
  0xb3   :  { %v324_v34 = vpop.xlane.xlu1 %323  ;;  %vm36_vm2 = vcmp.gt.f32.partialorder %v35_v31, 0.5 }
  0xb4   :  { %v326_v35 = vmul.f32 0.03125, %v324_v34  ;;  %v329_v36 = vmul.f32 %v3612_v32, %v3612_v32  ;;  %v3546_v34 = vmov 0  }
  0xb6   :  { %v328_v37 = vsub.f32 %v3603_v17, %v326_v35  ;;  %v331_v38 = vsel %vm179_vm0, %v329_v36, 0.0  ;;  %v133_v35 = vsel %vm36_vm2, 1, %v3546_v34 }
  0xb7   :  { %332 = vadd.xlane.f32.xlu0 %v331_v38  ;;  %v137_v36 = vrot.slane %v133_v35, %v136_v8  ;;  %v4286_v38 = vmov 0  ;;  %v3741_v35 = vld [vmem:[#allocation3 + $0x78] sm:$0xff] }
  0xb8   :  { %v330_v39 = vmul.f32 %v328_v37, %v328_v37 }
  0xb9   :  { %vm138_vm14 = vcmp.eq.s32.totalorder %v137_v36, 1 }
  0xba   :  { %v334_v40 = vsel %vm321_vm1, %v330_v39, 0.0 }
  0xbb   :  { %335 = vadd.xlane.f32.xlu1 %v334_v40  ;;  %v4289_v40 = vmov 0 }
 0x129   :  { %v195_v48 = vpop.xlane.xlu0 %194 }
 0x12a   :  { %v199_v49 = vmul.f32 0.03125, %v195_v48 }
 0x12c   :  { %v201_v50 = vadd.f32 1e-05, %v199_v49 }
 0x12d   :  { %v198_v51 = vpop.xlane.xlu1 %197 }
 0x12e   :  { %3402 = vrsqrt.f32 %v201_v50  ;;  %v200_v52 = vmul.f32 0.03125, %v198_v51 }
 0x130   :  { %v202_v53 = vadd.f32 1e-05, %v200_v52 }
 0x132   :  { %3404 = vrsqrt.f32 %v202_v53 }
 0x13b   :  { %v3403_v54 = vpop.eup %3402 }
 0x13c   :  { %v205_v56 = vmul.f32 %v3403_v54, %v189_v22 }
 0x13e   :  { %v211_v58 = vmul.f32 %v2839_v55, %v205_v56 }
 0x13f   :  { %v3405_v59 = vpop.eup %3404 }
 0x140   :  { %v333_v60 = vpop.xlane.xlu0 %332  ;;  %v206_v61 = vmul.f32 %v3405_v59, %v190_v26  ;;  %v217_v62 = vadd.f32 %v2840_v57, %v211_v58 }
 0x141   :  { %v337_v63 = vmul.f32 0.03125, %v333_v60 }
 0x142   :  { %v212_v0 = vmul.f32 %v2839_v55, %v206_v61  ;;  %3077 = vmatprep.mubr.msk.f32.mxu0 %vm179_vm0, %v217_v62 }
 0x143   :  { %v339_v1 = vadd.f32 1e-05, %v337_v63 }
 0x144   :  { %v218_v2 = vadd.f32 %v2840_v57, %v212_v0  ;;  %v336_v3 = vpop.xlane.xlu1 %335 }
 0x145   :  { %3406 = vrsqrt.f32 %v339_v1  ;;  %v338_v4 = vmul.f32 0.03125, %v336_v3 }
 0x146   :  { %3078 = vmatmul.mubr.msk.f32.vlgmr.msra.gmra.mxu0 %vm179_vm0, %v218_v2 }
 0x147   :  { %v340_v5 = vadd.f32 1e-05, %v338_v4 }
 0x149   :  { %3408 = vrsqrt.f32 %v340_v5 }
 0x152   :  { %v3407_v9 = vpop.eup %3406 }
 0x153   :  { %v343_v11 = vmul.f32 %v3407_v9, %v3612_v32  ;;  %v106_v32 = vand.u32 127, %v102_v6 }
 0x155   :  { %v345_v13 = vmul.f32 %v3637_v10, %v343_v11  ;;  %vm125_vm3 = vcmp.ge.s32.totalorder %v106_v32, 8  ;;  %vm116_vm7 = vcmp.lt.s32.totalorder %v106_v32, 8  ;;  %vm128_vm8 = vcmp.lt.s32.totalorder %v106_v32, 16 }
 0x156   :  { %v3409_v14 = vpop.eup %3408  ;;  %vm126_vm9 = vmand %vm119_vm4, %vm125_vm3  ;;  %vm521_vm4 = vcmask 123904  }
 0x157   :  { %v344_v15 = vmul.f32 %v3409_v14, %v328_v37  ;;  %v347_v18 = vadd.f32 %v3640_v12, %v345_v13  ;;  %vm127_vm10 = vmand %vm122_vm5, %vm125_vm3  ;;  %vm519_vm5 = vcmask 130048   ;;  %v3747_v37 = vld [vmem:[#allocation3 + $0x70] sm:$0xff] }
 0x158   :  { %vm117_vm11 = vmand %vm109_vm6, %vm116_vm7  ;;  %vm661_vm6 = vcmask 517376   ;;  %vm659_vm7 = vcmask 523520  }
 0x159   :  { %v346_v19 = vmul.f32 %v3637_v10, %v344_v15  ;;  %3088 = vmatprep.mubr.msk.f32.mxu1 %vm179_vm0, %v347_v18  ;;  %vm129_vm12 = vmand %vm126_vm9, %vm128_vm8  ;;  %vm2742_vm9 = vcmask 1042432  }
 0x15a   :  { %vm3675_vm13 = vmand %vm127_vm10, %vm128_vm8  ;;  %vm665_vm8 = vcmask 523264   ;;  %vm2739_vm10 = vcmask 39936  }
 0x15b   :  { %v348_v20 = vadd.f32 %v3640_v12, %v346_v19  ;;  %vm3679_vm15 = vmor %vm117_vm11, %vm129_vm12  ;;  %v3691_v8 = vsel %vm3675_vm13, -1e+10, %v3547_v7  ;;  %v4277_v19 = vmov 0.0  }
 0x15c   :  { %vm3685_vm2 = vmand %vm3675_vm13, %vm138_vm14  ;;  %v3701_v41 = vsel %vm3679_vm15, -1e+10, %v3547_v7  ;;  %v3753_v7 = vld [vmem:[#allocation3 + $0x68] sm:$0xff] }
 0x15d   :  { %3089 = vmatmul.mubr.msk.f32.vlgmr.msra.gmra.mxu1 %vm179_vm0, %v348_v20  ;;  %v4287_v38 = vsel %vm3685_vm2, 4294967295, %v4286_v38  ;;  %vm3695_vm3 = vmand %vm3679_vm15, %vm138_vm14  ;;  %4292 = vst [vmem:[#allocation8_spill] sm:$0xff] %v3701_v41  ;;  %v3716_v20 = vsel %vm3675_vm13, 1.0, %v4277_v19 }
 0x15e   :  { %4288 = vst [vmem:[#allocation6_spill] sm:$0xff] %v4287_v38  ;;  %v4290_v40 = vsel %vm3695_vm3, 4294967295, %v4289_v40 }
 0x15f   :  { %4291 = vst [vmem:[#allocation7_spill] sm:$0xff] %v4290_v40 }
 0x206   :  { %v3079_v22 = vpop.f32.mrf.mxu0 }
 0x207   :  { %v3648_v23 = vadd.f32 %v3079_v22, %v2841_v21 }
 0x208   :  { %v295_v24 = vpop.f32.mrf.mxu0 }
 0x209   :  { %v3650_v25 = vadd.f32 %v2841_v21, %v295_v24  ;;  %3091 = vmatprep.subr.msk.mxu0 %vm179_vm0, %v3648_v23  ;;  %v3721_v21 = vsel %vm3679_vm15, 1.0, %v4277_v19 }
 0x20a   :  { %3092 = vmatpush3.xpose.msk.msra.mxu0 %vm179_vm0, %v3648_v23 }
 0x20b   :  { %3093 = vmatprep.subr.msk.mxu0 %vm179_vm0, %v3650_v25 }
 0x20e   :  { %3094 = vmatpush3.xpose.msk.msra.mxu0 %vm179_vm0, %v3650_v25 }
 0x21d   :  { %v3090_v26 = vpop.f32.mrf.mxu1 }
 0x21e   :  { %v427_v30 = vadd.f32 %v3090_v26, %v3660_v27 }
 0x21f   :  { %v421_v28 = vpop.f32.mrf.mxu1 }
 0x220   :  { %v422_v29 = vadd.f32 %v3660_v27, %v421_v28 }
 0x222   :  { %3095 = vmatprep.mubr.msk.f32.mxu0 %vm179_vm0, %v422_v29 }
 0x223   :  { %3096 = vmatmul.mubr.msk.f32.vlgmr.msra.gmra.mxu0 %vm179_vm0, %v427_v30 }
 0x2e3   :  { %v3097_v39 = vpop.f32.mrf.mxu0 }
 0x2e4   :  { %v518_v42 = vsel %vm3685_vm2, %v3097_v39, %v3691_v8  ;;  %v3757_v39 = vld [vmem:[#allocation3 + $0x60] sm:$0xff] }
 0x2e5   :  { %v508_v43 = vpop.f32.mrf.mxu0  ;;  %v522_v49 = vsel %vm521_vm4, %v518_v42, -inf }
 0x2e6   :  { %v517_v48 = vsel %vm3695_vm3, %v508_v43, %v3701_v41  ;;  %v3764_v43 = vld [vmem:[#allocation3 + $0x50] sm:$0xff] }
 0x2e7   :  { %v520_v50 = vsel %vm519_vm5, %v517_v48, -inf }
 0x2e8   :  { %v523_v51 = vmax.f32 %v520_v50, %v522_v49  ;;  %v3771_v49 = vld [vmem:[#allocation3 + $0x40] sm:$0xff] }
 0x2ea   :  { %v524_v52 = vrot.slane %v523_v51, 4 }
 0x2ec   :  { %v525_v53 = vmax.f32 %v523_v51, %v524_v52 }
 0x2ee   :  { %v526_v54 = vrot.slane %v525_v53, 2 }
 0x2f0   :  { %v527_v55 = vmax.f32 %v525_v53, %v526_v54 }
 0x2f2   :  { %v528_v56 = vrot.slane %v527_v55, 1 }
 0x2f4   :  { %v529_v57 = vmax.f32 %v527_v55, %v528_v56  ;;  %v3796_v56 = vld [vmem:[#allocation3 + $0x187] ss:$0 sm:$0xff] }
 0x2f6   :  { %v530_v58 = vsub.f32 %v517_v48, %v529_v57  ;;  %v531_v59 = vsub.f32 %v518_v42, %v529_v57  ;;  %v3761_v42 = vld [vmem:[#allocation3 + $0x58] sm:$0xff]  ;;  %v3767_v48 = vld [vmem:[#allocation3 + $0x48] sm:$0xff] }
 0x2f8   :  { %v532_v60 = vmul.f32 1.442695, %v530_v58  ;;  %v534_v61 = vmul.f32 1.442695, %v531_v59 }
 0x2fa   :  { %3410 = vpow2.f32 %v532_v60 }
 0x2fb   :  { %3412 = vpow2.f32 %v534_v61 }
 0x307   :  { %v3411_v62 = vpop.eup %3410 }
 0x308   :  { %v3413_v63 = vpop.eup %3412  ;;  %v536_v0 = vsel %vm519_vm5, %v3411_v62, 0.0 }
 0x309   :  { %v537_v1 = vsel %vm521_vm4, %v3413_v63, 0.0 }
 0x30a   :  { %v538_v2 = vadd.f32 %v537_v1, %v536_v0 }
 0x30c   :  { %v539_v3 = vrot.slane %v538_v2, 4 }
 0x30e   :  { %v540_v4 = vadd.f32 %v539_v3, %v538_v2 }
 0x310   :  { %v541_v5 = vrot.slane %v540_v4, 2 }
 0x312   :  { %v542_v9 = vadd.f32 %v541_v5, %v540_v4 }
 0x314   :  { %v543_v11 = vrot.slane %v542_v9, 1 }
 0x316   :  { %v544_v13 = vadd.f32 %v543_v11, %v542_v9 }
 0x318   :  { %3414 = vrcp.f32 %v544_v13 }
 0x325   :  { %v3415_v14 = vpop.eup %3414 }
 0x326   :  { %v547_v15 = vmul.f32 %v3415_v14, %v3413_v63  ;;  %v546_v18 = vmul.f32 %v3415_v14, %v3411_v62 }
 0x328   :  { %v549_v22 = vadd.f32 1e-08, %v547_v15  ;;  %v548_v24 = vadd.f32 1e-08, %v546_v18 }
 0x32a   :  { %v551_v26 = vmul.f32 %v3716_v20, %v549_v22  ;;  %v550_v28 = vmul.f32 %v3721_v21, %v548_v24 }
 0x32c   :  { %v555_v29 = vsel %vm521_vm4, %v551_v26, 0.0  ;;  %v552_v30 = vsel %vm519_vm5, %v550_v28, 0.0 }
 0x32d   :  { %556 = vadd.xlane.f32.xlu1 %v555_v29  ;;  %553 = vadd.xlane.f32.xlu0 %v552_v30 }
 0x33e   :  { %562 = vrot.lane.b32.xlu1 %v3650_v25, %s3549_s2 }
 0x342   :  { %653 = vrot.lane.b32.xlu1 %v3601_v16, %s3550_s30 }
 0x343   :  { %564 = vrot.lane.b32.xlu0 %v3648_v23, %s3549_s2 }
 0x346   :  { %655 = vrot.lane.b32.xlu1 %v3603_v17, %s3550_s30 }
 0x3b6   :  { %v557_v31 = vpop.xlane.xlu1 %556  ;;  %v554_v32 = vpop.xlane.xlu0 %553 }
 0x3b7   :  { %3416 = vrcp.f32 %v557_v31 }
 0x3b8   :  { %3418 = vrcp.f32 %v554_v32 }
 0x3ba   :  { %v3735_v33 = vpop.permute.xlu0 %564  ;;  %v3738_v34 = vpop.permute.xlu1 %562 }
 0x3bb   :  { %3098 = vmatprep.subr.mxu1 %v3735_v33 }
 0x3bc   :  { %3099 = vmatpush3.msra.mxu1 %v3735_v33 }
 0x3bd   :  { %3100 = vmatprep.subr.mxu1 %v3738_v34 }
 0x3be   :  { %3101 = vmatpush3.msra.mxu1 %v3738_v34  ;;  %v3778_v50 = vpop.permute.xlu1 %653 }
 0x3bf   :  { %3105 = vmatprep.subr.mxu1 %v3741_v35 }
 0x3c2   :  { %v656_v51 = vpop.permute.xlu1 %655 }
 0x3c4   :  { %v3417_v16 = vpop.eup %3416 }
 0x3c5   :  { %v3419_v17 = vpop.eup %3418  ;;  %v561_v36 = vmul.f32 %v3417_v16, %v551_v26 }
 0x3c6   :  { %v559_v6 = vmul.f32 %v3419_v17, %v550_v28 }
 0x3c8   :  { %3102 = vmatprep.mubr.msk.f32.mxu1 %vm519_vm5, %v559_v6 }
 0x3c9   :  { %3103 = vmatmul.mubr.msk.f32.vlgmr.msra.gmra.mxu1 %vm519_vm5, %v561_v36 }
 0x3ca   :  { %3106 = vmatpush3.msra.mxu1 %v3741_v35 }
 0x3cb   :  { %3107 = vmatprep.subr.mxu1 %v3747_v37 }
 0x3cc   :  { %3108 = vmatpush3.msra.mxu1 %v3747_v37 }
 0x3cd   :  { %3109 = vmatprep.subr.mxu1 %v3753_v7 }
 0x3ce   :  { %3110 = vmatpush3.msra.mxu1 %v3753_v7 }
 0x3cf   :  { %3111 = vmatprep.subr.mxu1 %v3757_v39 }
 0x3d0   :  { %3112 = vmatpush3.msra.mxu1 %v3757_v39 }
 0x3d1   :  { %3113 = vmatprep.subr.mxu1 %v3761_v42 }
 0x3d2   :  { %3114 = vmatpush3.msra.mxu1 %v3761_v42 }
 0x3d3   :  { %3115 = vmatprep.subr.mxu1 %v3764_v43 }
 0x3d4   :  { %3116 = vmatpush3.msra.mxu1 %v3764_v43 }
 0x3d5   :  { %3117 = vmatprep.subr.mxu1 %v3767_v48 }
 0x3d6   :  { %3118 = vmatpush3.msra.mxu1 %v3767_v48 }
 0x3d7   :  { %3119 = vmatprep.subr.mxu1 %v3771_v49 }
 0x3d8   :  { %3120 = vmatpush3.msra.mxu1 %v3771_v49 }
 0x3d9   :  { %3170 = vmatprep.subr.mxu1 %v3619_v44 }
 0x489   :  { %v3104_v52 = vpop.f32.mrf.mxu1 }
 0x48a   :  { %650 = vst.msk [vmem:[#allocation2 + $0x8] sm:$0x3] %vm321_vm1, %v3104_v52 }
 0x48b   :  { %v640_v53 = vpop.f32.mrf.mxu1  ;;  %662 = vst.msk [vmem:[#allocation2 + $0x8] sm:$0x3] %vm661_vm6, %v656_v51 }
 0x48c   :  { %649 = vst.msk [vmem:[#allocation2] sm:$0xff] %vm179_vm0, %v640_v53 }
 0x48d   :  { %660 = vst.msk [vmem:[#allocation2] sm:$0xff] %vm659_vm7, %v3778_v50 }
 0x492   :  { %v664_v54 = vld [vmem:[#allocation2 + $0x8] sm:$0x3] }
 0x494   :  { %v663_v55 = vld [vmem:[#allocation2] sm:$0xff] }
 0x495   :  { %3121 = vmatprep.mubr.msk.f32.mxu1 %vm665_vm8, %v663_v55 }
 0x496   :  { %3122 = vmatmul.mubr.msk.f32.vlgmr.msra.gmra.mxu1 %vm665_vm8, %v664_v54 }
 0x497   :  { %3171 = vmatpush3.msra.mxu1 %v3619_v44 }
 0x498   :  { %3172 = vmatprep.subr.mxu1 %v3621_v45 }
 0x499   :  { %3173 = vmatpush3.msra.mxu1 %v3621_v45 }
 0x49a   :  { %3174 = vmatprep.subr.mxu1 %v3625_v46 }
 0x49b   :  { %3175 = vmatpush3.msra.mxu1 %v3625_v46 }
 0x49c   :  { %3176 = vmatprep.subr.mxu1 %v3631_v47 }
 0x49d   :  { %3177 = vmatpush3.msra.mxu1 %v3631_v47 }
 0x49e   :  { %3181 = vmatprep.subr.msk.mxu1 %vm179_vm0, %v3648_v23 }
 0x556   :  { %v3123_v57 = vpop.f32.mrf.mxu1 }
 0x557   :  { %v744_v44 = vadd.f32 %v3123_v57, %v3796_v56 }
 0x558   :  { %v738_v58 = vpop.f32.mrf.mxu1 }
 0x559   :  { %v739_v59 = vadd.f32 %v3796_v56, %v738_v58  ;;  %763 = vrot.lane.b32.xlu1 %v744_v44, %s3550_s30  ;;  %v2856_v45 = vmul.f32 -1.442695, %v744_v44 }
 0x55b   :  { %761 = vrot.lane.b32.xlu0 %v739_v59, %s3550_s30  ;;  %v2855_v46 = vmul.f32 -1.442695, %v739_v59  ;;  %3420 = vpow2.f32 %v2856_v45 }
 0x55d   :  { %3422 = vpow2.f32 %v2855_v46 }
 0x568   :  { %v3421_v47 = vpop.eup %3420 }
 0x569   :  { %v754_v61 = vadd.f32 1.0, %v3421_v47 }
 0x56a   :  { %v3423_v60 = vpop.eup %3422 }
 0x56b   :  { %v753_v62 = vadd.f32 1.0, %v3423_v60  ;;  %3424 = vrcp.f32 %v754_v61  ;;  %v2838_v60 = vld [vmem:[#allocation3 + $0x18f] ss:$0 sm:$0xff]  ;;  %v2837_v61 = vld [vmem:[#allocation3 + $0x18b] ss:$0 sm:$0xff] }
 0x56d   :  { %3426 = vrcp.f32 %v753_v62  ;;  %v3825_v62 = vld [vmem:[#allocation3 + $0x98] sm:$0xff] }
 0x56e   :  { %3124 = vmatprep.subr.mxu0 %v3825_v62 }
 0x56f   :  { %3125 = vmatpush3.msra.mxu0 %v3825_v62 }
 0x578   :  { %v3425_v63 = vpop.eup %3424 }
 0x579   :  { %v782_v18 = vsub.f32 1.0, %v3425_v63  ;;  %v794_v24 = vmul.f32 %v3425_v63, %v656_v51 }
 0x57a   :  { %v3427_v2 = vpop.eup %3426 }
 0x57b   :  { %v781_v28 = vsub.f32 1.0, %v3427_v2  ;;  %v793_v31 = vmul.f32 %v3427_v2, %v3778_v50 }
 0x5cb   :  { %v764_v0 = vpop.permute.xlu1 %763 }
 0x5cc   :  { %v768_v1 = vmul.f32 %v3425_v63, %v764_v0  ;;  %v3827_v63 = vld [vmem:[#allocation3 + $0x90] sm:$0xff]  ;;  %v3831_v0 = vld [vmem:[#allocation3 + $0x88] sm:$0xff] }
 0x5cd   :  { %v762_v3 = vpop.permute.xlu0 %761  ;;  %3126 = vmatprep.subr.mxu0 %v3827_v63 }
 0x5ce   :  { %v767_v4 = vmul.f32 %v3427_v2, %v762_v3  ;;  %773 = vrot.lane.b32.xlu1 %v768_v1, %s3551_s5  ;;  %3127 = vmatpush3.msra.mxu0 %v3827_v63 }
 0x5cf   :  { %3128 = vmatprep.subr.mxu0 %v3831_v0 }
 0x5d0   :  { %771 = vrot.lane.b32.xlu0 %v767_v4, %s3551_s5  ;;  %3129 = vmatpush3.msra.mxu0 %v3831_v0 }
 0x640   :  { %v774_v5 = vpop.permute.xlu1 %773 }
 0x641   :  { %v778_v9 = vadd.f32 %v774_v5, %v744_v44 }
 0x642   :  { %v772_v11 = vpop.permute.xlu0 %771 }
 0x643   :  { %3428 = vtanh.f32 %v778_v9  ;;  %v777_v13 = vadd.f32 %v772_v11, %v739_v59  ;;  %v3837_v11 = vld [vmem:[#allocation3 + $0x80] sm:$0xff] }
 0x644   :  { %3130 = vmatprep.subr.mxu0 %v3837_v11 }
 0x645   :  { %3430 = vtanh.f32 %v777_v13  ;;  %3131 = vmatpush3.msra.mxu0 %v3837_v11  ;;  %v3841_v13 = vld [vmem:[#allocation3 + $0x118] sm:$0xff] }
 0x646   :  { %3135 = vmatprep.subr.mxu0 %v3841_v13 }
 0x650   :  { %v3429_v14 = vpop.eup %3428 }
 0x651   :  { %787 = vrot.lane.b32.xlu1 %v3429_v14, %s3549_s2 }
 0x652   :  { %v3431_v15 = vpop.eup %3430 }
 0x653   :  { %785 = vrot.lane.b32.xlu0 %v3431_v15, %s3549_s2 }
 0x6c3   :  { %v788_v22 = vpop.permute.xlu1 %787 }
 0x6c4   :  { %v792_v26 = vmul.f32 %v788_v22, %v782_v18 }
 0x6c5   :  { %v786_v29 = vpop.permute.xlu0 %785 }
 0x6c6   :  { %v3806_v30 = vadd.f32 %v794_v24, %v792_v26  ;;  %v791_v32 = vmul.f32 %v786_v29, %v781_v28 }
 0x6c8   :  { %v3809_v16 = vadd.f32 %v793_v31, %v791_v32  ;;  %801 = vrot.lane.b32.xlu1 %v3806_v30, %s3549_s2 }
 0x6ca   :  { %799 = vrot.lane.b32.xlu0 %v3809_v16, %s3549_s2 }
 0x73a   :  { %v802_v17 = vpop.permute.xlu1 %801 }
 0x73b   :  { %v808_v36 = vsel %vm321_vm1, %v802_v17, 0.0 }
 0x73c   :  { %809 = vadd.xlane.f32.xlu1 %v808_v36  ;;  %v800_v6 = vpop.permute.xlu0 %799 }
 0x73d   :  { %v805_v51 = vsel %vm179_vm0, %v800_v6, 0.0  ;;  %v3855_v6 = vld [vmem:[#allocation3 + $0x110] sm:$0xff] }
 0x73e   :  { %806 = vadd.xlane.f32.xlu0 %v805_v51  ;;  %v3859_v51 = vld [vmem:[#allocation3 + $0x108] sm:$0xff] }
 0x7c5   :  { %v810_v52 = vpop.xlane.xlu1 %809 }
 0x7c6   :  { %v812_v53 = vmul.f32 0.03125, %v810_v52  ;;  %v3863_v52 = vld [vmem:[#allocation3 + $0x100] sm:$0xff] }
 0x7c7   :  { %v807_v50 = vpop.xlane.xlu0 %806 }
 0x7c8   :  { %v814_v54 = vsub.f32 %v3806_v30, %v812_v53  ;;  %v811_v55 = vmul.f32 0.03125, %v807_v50  ;;  %v3867_v53 = vld [vmem:[#allocation3 + $0xf8] sm:$0xff]  ;;  %v3871_v50 = vld [vmem:[#allocation3 + $0xf0] sm:$0xff] }
 0x7ca   :  { %v813_v57 = vsub.f32 %v3809_v16, %v811_v55  ;;  %v816_v44 = vmul.f32 %v814_v54, %v814_v54  ;;  %v3879_v55 = vld [vmem:[#allocation3 + $0xe0] sm:$0xff] }
 0x7cc   :  { %821 = vrot.lane.b32.xlu1 %v816_v44, %s3549_s2  ;;  %v815_v58 = vmul.f32 %v813_v57, %v813_v57  ;;  %v3887_v44 = vld [vmem:[#allocation3 + $0xd0] sm:$0xff] }
 0x7ce   :  { %819 = vrot.lane.b32.xlu0 %v815_v58, %s3549_s2  ;;  %v3891_v58 = vld [vmem:[#allocation3 + $0xc8] sm:$0xff] }
 0x83e   :  { %v822_v59 = vpop.permute.xlu1 %821 }
 0x83f   :  { %v828_v45 = vsel %vm321_vm1, %v822_v59, 0.0  ;;  %v3895_v59 = vld [vmem:[#allocation3 + $0xc0] sm:$0xff] }
 0x840   :  { %829 = vadd.xlane.f32.xlu1 %v828_v45  ;;  %v820_v46 = vpop.permute.xlu0 %819  ;;  %v3901_v45 = vld [vmem:[#allocation3 + $0xb8] sm:$0xff] }
 0x841   :  { %v825_v47 = vsel %vm179_vm0, %v820_v46, 0.0  ;;  %v3905_v46 = vld [vmem:[#allocation3 + $0xb0] sm:$0xff] }
 0x842   :  { %826 = vadd.xlane.f32.xlu0 %v825_v47  ;;  %v3909_v47 = vld [vmem:[#allocation3 + $0xa8] sm:$0xff] }
 0x851   :  { %846 = vrot.lane.b32.xlu1 %v2838_v60, %s3550_s30  ;;  %v3912_v60 = vld [vmem:[#allocation3 + $0xa0] sm:$0xff] }
 0x858   :  { %840 = vrot.lane.b32.xlu0 %v2837_v61, %s3550_s30  ;;  %v3918_v61 = vld [vmem:[#allocation3 + $0x188] ss:$0 sm:$0xff] }
 0x8c9   :  { %v830_v1 = vpop.xlane.xlu1 %829 }
 0x8ca   :  { %v832_v2 = vmul.f32 0.03125, %v830_v1 }
 0x8cb   :  { %v827_v3 = vpop.xlane.xlu0 %826 }
 0x8cc   :  { %v834_v4 = vadd.f32 1e-05, %v832_v2  ;;  %v831_v5 = vmul.f32 0.03125, %v827_v3 }
 0x8cd   :  { %v3846_v24 = vpop.permute.xlu1 %846 }
 0x8ce   :  { %3432 = vrsqrt.f32 %v834_v4  ;;  %v833_v9 = vadd.f32 1e-05, %v831_v5 }
 0x8cf   :  { %v3844_v15 = vpop.permute.xlu0 %840 }
 0x8d0   :  { %3434 = vrsqrt.f32 %v833_v9 }
 0x8db   :  { %v3433_v14 = vpop.eup %3432 }
 0x8dc   :  { %v838_v18 = vmul.f32 %v3433_v14, %v814_v54  ;;  %v3875_v54 = vld [vmem:[#allocation3 + $0xe8] sm:$0xff]  ;;  %v3930_v14 = vld [vmem:[#allocation3 + $0x183] ss:$0 sm:$0xff] }
 0x8dd   :  { %v3435_v22 = vpop.eup %3434 }
 0x8de   :  { %v844_v26 = vmul.f32 %v3844_v15, %v838_v18  ;;  %v837_v28 = vmul.f32 %v3435_v22, %v813_v57  ;;  %v3883_v57 = vld [vmem:[#allocation3 + $0xd8] sm:$0xff] }
 0x8e0   :  { %v850_v29 = vadd.f32 %v3846_v24, %v844_v26  ;;  %v843_v31 = vmul.f32 %v3844_v15, %v837_v28 }
 0x8e2   :  { %855 = vrot.lane.b32.xlu1 %v850_v29, %s3549_s2  ;;  %v849_v32 = vadd.f32 %v3846_v24, %v843_v31 }
 0x8e4   :  { %853 = vrot.lane.b32.xlu0 %v849_v32, %s3549_s2 }
 0x954   :  { %v856_v36 = vpop.permute.xlu1 %855 }
 0x956   :  { %v854_v17 = vpop.permute.xlu0 %853 }
 0x957   :  { %3132 = vmatprep.mubr.msk.f32.mxu0 %vm179_vm0, %v854_v17 }
 0x958   :  { %3133 = vmatmul.mubr.msk.f32.vlgmr.msra.gmra.mxu0 %vm179_vm0, %v856_v36 }
 0x959   :  { %3136 = vmatpush3.msra.mxu0 %v3841_v13 }
 0x95a   :  { %3137 = vmatprep.subr.mxu0 %v3855_v6 }
 0x95b   :  { %3138 = vmatpush3.msra.mxu0 %v3855_v6 }
 0x95c   :  { %3139 = vmatprep.subr.mxu0 %v3859_v51 }
 0x95d   :  { %3140 = vmatpush3.msra.mxu0 %v3859_v51 }
 0x95e   :  { %3141 = vmatprep.subr.mxu0 %v3863_v52 }
 0x95f   :  { %3142 = vmatpush3.msra.mxu0 %v3863_v52 }
 0x960   :  { %3143 = vmatprep.subr.mxu0 %v3867_v53 }
 0x961   :  { %3144 = vmatpush3.msra.mxu0 %v3867_v53 }
 0x962   :  { %3145 = vmatprep.subr.mxu0 %v3871_v50 }
 0x963   :  { %3146 = vmatpush3.msra.mxu0 %v3871_v50 }
 0x964   :  { %3147 = vmatprep.subr.mxu0 %v3875_v54 }
 0x965   :  { %3148 = vmatpush3.msra.mxu0 %v3875_v54 }
 0x966   :  { %3149 = vmatprep.subr.mxu0 %v3879_v55 }
 0x967   :  { %3150 = vmatpush3.msra.mxu0 %v3879_v55 }
 0x968   :  { %3151 = vmatprep.subr.mxu0 %v3883_v57 }
 0x969   :  { %3152 = vmatpush3.msra.mxu0 %v3883_v57 }
 0x96a   :  { %3153 = vmatprep.subr.mxu0 %v3887_v44 }
 0x96b   :  { %3154 = vmatpush3.msra.mxu0 %v3887_v44 }
 0x96c   :  { %3155 = vmatprep.subr.mxu0 %v3891_v58 }
 0x96d   :  { %3156 = vmatpush3.msra.mxu0 %v3891_v58 }
 0x96e   :  { %3157 = vmatprep.subr.mxu0 %v3895_v59 }
 0x96f   :  { %3158 = vmatpush3.msra.mxu0 %v3895_v59 }
 0x970   :  { %3159 = vmatprep.subr.mxu0 %v3901_v45 }
 0x971   :  { %3160 = vmatpush3.msra.mxu0 %v3901_v45 }
 0x972   :  { %3161 = vmatprep.subr.mxu0 %v3905_v46 }
 0x973   :  { %3162 = vmatpush3.msra.mxu0 %v3905_v46 }
 0x974   :  { %3163 = vmatprep.subr.mxu0 %v3909_v47 }
 0x975   :  { %3164 = vmatpush3.msra.mxu0 %v3909_v47 }
 0x976   :  { %3165 = vmatprep.subr.mxu0 %v3912_v60 }
 0x977   :  { %3166 = vmatpush3.msra.mxu0 %v3912_v60 }
 0x978   :  { %3214 = vmatprep.subr.mxu0 %v3825_v62 }
 0xa18   :  { %v3134_v1 = vpop.f32.mrf.mxu0 }
 0xa19   :  { %v933_v2 = vadd.f32 %v3134_v1, %v3918_v61 }
 0xa1a   :  { %v927_v3 = vpop.f32.mrf.mxu0 }
 0xa1b   :  { %v928_v4 = vadd.f32 %v3918_v61, %v927_v3  ;;  %v937_v9 = vmax.f32 %v933_v2, 0.0 }
 0xa1d   :  { %v936_v5 = vmax.f32 %v928_v4, 0.0 }
 0xa1f   :  { %3167 = vmatprep.mubr.f32.mxu0 %v936_v5 }
 0xa20   :  { %3168 = vmatmul.mubr.f32.vlgmr.msra.gmra.mxu0 %v937_v9 }
 0xa21   :  { %3215 = vmatpush3.msra.mxu0 %v3825_v62 }
 0xa22   :  { %3216 = vmatprep.subr.mxu0 %v3827_v63 }
 0xa23   :  { %3217 = vmatpush3.msra.mxu0 %v3827_v63 }
 0xa24   :  { %3218 = vmatprep.subr.mxu0 %v3831_v0 }
 0xa25   :  { %3219 = vmatpush3.msra.mxu0 %v3831_v0 }
 0xa26   :  { %3220 = vmatprep.subr.mxu0 %v3837_v11 }
 0xa27   :  { %3221 = vmatpush3.msra.mxu0 %v3837_v11 }
 0xa28   :  { %3225 = vmatprep.subr.mxu0 %v3841_v13 }
 0xae0   :  { %v3169_v18 = vpop.f32.mrf.mxu0 }
 0xae1   :  { %v1010_v22 = vadd.f32 %v3169_v18, %v3930_v14 }
 0xae2   :  { %v1004_v26 = vpop.f32.mrf.mxu0 }
 0xae3   :  { %v1005_v28 = vadd.f32 %v3930_v14, %v1004_v26  ;;  %1017 = vrot.lane.b32.xlu1 %v1010_v22, %s3550_s30 }
 0xae5   :  { %1015 = vrot.lane.b32.xlu0 %v1005_v28, %s3550_s30 }
 0xb55   :  { %v1018_v29 = vpop.permute.xlu1 %1017 }
 0xb56   :  { %v3937_v31 = vadd.f32 %v1018_v29, %v3806_v30 }
 0xb57   :  { %v1016_v32 = vpop.permute.xlu0 %1015 }
 0xb58   :  { %v3940_v17 = vadd.f32 %v1016_v32, %v3809_v16  ;;  %1027 = vrot.lane.b32.xlu1 %v3937_v31, %s3549_s2 }
 0xb5a   :  { %1025 = vrot.lane.b32.xlu0 %v3940_v17, %s3549_s2 }
 0xbca   :  { %v1028_v36 = vpop.permute.xlu1 %1027 }
 0xbcb   :  { %v1034_v1 = vsel %vm321_vm1, %v1028_v36, 0.0 }
 0xbcc   :  { %1035 = vadd.xlane.f32.xlu1 %v1034_v1  ;;  %v1026_v2 = vpop.permute.xlu0 %1025 }
 0xbcd   :  { %v1031_v3 = vsel %vm179_vm0, %v1026_v2, 0.0 }
 0xbce   :  { %1032 = vadd.xlane.f32.xlu0 %v1031_v3 }
 0xc55   :  { %v1036_v30 = vpop.xlane.xlu1 %1035 }
 0xc56   :  { %v1038_v4 = vmul.f32 0.03125, %v1036_v30 }
 0xc57   :  { %v1033_v5 = vpop.xlane.xlu0 %1032 }
 0xc58   :  { %v1040_v16 = vsub.f32 %v3937_v31, %v1038_v4  ;;  %v1037_v9 = vmul.f32 0.03125, %v1033_v5 }
 0xc5a   :  { %v1039_v18 = vsub.f32 %v3940_v17, %v1037_v9  ;;  %v1042_v22 = vmul.f32 %v1040_v16, %v1040_v16 }
 0xc5c   :  { %1047 = vrot.lane.b32.xlu1 %v1042_v22, %s3549_s2  ;;  %v1041_v26 = vmul.f32 %v1039_v18, %v1039_v18 }
 0xc5e   :  { %1045 = vrot.lane.b32.xlu0 %v1041_v26, %s3549_s2 }
 0xcce   :  { %v1048_v28 = vpop.permute.xlu1 %1047 }
 0xccf   :  { %v1054_v29 = vsel %vm321_vm1, %v1048_v28, 0.0 }
 0xcd0   :  { %1055 = vadd.xlane.f32.xlu1 %v1054_v29  ;;  %v1046_v32 = vpop.permute.xlu0 %1045 }
 0xcd1   :  { %v1051_v36 = vsel %vm179_vm0, %v1046_v32, 0.0 }
 0xcd2   :  { %1052 = vadd.xlane.f32.xlu0 %v1051_v36 }
 0xce1   :  { %1072 = vrot.lane.b32.xlu1 %v3640_v12, %s3550_s30 }
 0xce8   :  { %1066 = vrot.lane.b32.xlu0 %v3637_v10, %s3550_s30 }
 0xd59   :  { %v1056_v1 = vpop.xlane.xlu1 %1055 }
 0xd5a   :  { %v1058_v2 = vmul.f32 0.03125, %v1056_v1 }
 0xd5b   :  { %v1053_v3 = vpop.xlane.xlu0 %1052 }
 0xd5c   :  { %v1060_v30 = vadd.f32 1e-05, %v1058_v2  ;;  %v1057_v4 = vmul.f32 0.03125, %v1053_v3 }
 0xd5d   :  { %v3960_v29 = vpop.permute.xlu1 %1072 }
 0xd5e   :  { %3436 = vrsqrt.f32 %v1060_v30  ;;  %v1059_v5 = vadd.f32 1e-05, %v1057_v4 }
 0xd5f   :  { %v3958_v22 = vpop.permute.xlu0 %1066 }
 0xd60   :  { %3438 = vrsqrt.f32 %v1059_v5 }
 0xd6b   :  { %v3437_v9 = vpop.eup %3436 }
 0xd6c   :  { %v1064_v26 = vmul.f32 %v3437_v9, %v1040_v16 }
 0xd6d   :  { %v3439_v28 = vpop.eup %3438 }
 0xd6e   :  { %v1063_v32 = vmul.f32 %v3439_v28, %v1039_v18  ;;  %v1070_v12 = vmul.f32 %v3958_v22, %v1064_v26 }
 0xd70   :  { %v1069_v10 = vmul.f32 %v3958_v22, %v1063_v32  ;;  %v1076_v36 = vadd.f32 %v3960_v29, %v1070_v12 }
 0xd72   :  { %1081 = vrot.lane.b32.xlu1 %v1076_v36, %s3549_s2  ;;  %v1075_v1 = vadd.f32 %v3960_v29, %v1069_v10 }
 0xd74   :  { %1079 = vrot.lane.b32.xlu0 %v1075_v1, %s3549_s2 }
 0xde4   :  { %v1082_v3 = vpop.permute.xlu1 %1081 }
 0xde6   :  { %v1080_v2 = vpop.permute.xlu0 %1079 }
 0xde7   :  { %3178 = vmatprep.mubr.msk.f32.mxu1 %vm179_vm0, %v1080_v2 }
 0xde8   :  { %3179 = vmatmul.mubr.msk.f32.vlgmr.msra.gmra.mxu1 %vm179_vm0, %v1082_v3 }
 0xde9   :  { %3182 = vmatpush3.xpose.msk.msra.mxu1 %vm179_vm0, %v3648_v23 }
 0xdea   :  { %3183 = vmatprep.subr.msk.mxu1 %vm179_vm0, %v3650_v25 }
 0xded   :  { %3184 = vmatpush3.xpose.msk.msra.mxu1 %vm179_vm0, %v3650_v25 }
 0xdee   :  { %3188 = vmatprep.subr.mxu1 %v3735_v33 }
 0xea8   :  { %v3180_v16 = vpop.f32.mrf.mxu1 }
 0xea9   :  { %v1159_v4 = vadd.f32 %v3180_v16, %v3660_v27 }
 0xeaa   :  { %v1153_v18 = vpop.f32.mrf.mxu1 }
 0xeab   :  { %v1154_v30 = vadd.f32 %v3660_v27, %v1153_v18 }
 0xead   :  { %3185 = vmatprep.mubr.msk.f32.mxu1 %vm179_vm0, %v1154_v30 }
 0xeae   :  { %3186 = vmatmul.mubr.msk.f32.vlgmr.msra.gmra.mxu1 %vm179_vm0, %v1159_v4 }
 0xeaf   :  { %3189 = vmatpush3.msra.mxu1 %v3735_v33 }
 0xeb0   :  { %3190 = vmatprep.subr.mxu1 %v3738_v34 }
 0xeb1   :  { %3191 = vmatpush3.msra.mxu1 %v3738_v34 }
 0xeb2   :  { %3195 = vmatprep.subr.mxu1 %v3741_v35 }
 0xf6e   :  { %v3187_v5 = vpop.f32.mrf.mxu1 }
 0xf6f   :  { %v1244_v9 = vsel %vm3685_vm2, %v3187_v5, %v3691_v8 }
 0xf70   :  { %v1234_v26 = vpop.f32.mrf.mxu1  ;;  %v1246_v28 = vsel %vm521_vm4, %v1244_v9, -inf }
 0xf71   :  { %v1243_v27 = vsel %vm3695_vm3, %v1234_v26, %v3701_v41 }
 0xf72   :  { %v1245_v32 = vsel %vm519_vm5, %v1243_v27, -inf }
 0xf73   :  { %v1247_v12 = vmax.f32 %v1245_v32, %v1246_v28 }
 0xf75   :  { %v1248_v10 = vrot.slane %v1247_v12, 4 }
 0xf77   :  { %v1249_v36 = vmax.f32 %v1247_v12, %v1248_v10 }
 0xf79   :  { %v1250_v1 = vrot.slane %v1249_v36, 2 }
 0xf7b   :  { %v1251_v2 = vmax.f32 %v1249_v36, %v1250_v1 }
 0xf7d   :  { %v1252_v3 = vrot.slane %v1251_v2, 1 }
 0xf7f   :  { %v1253_v16 = vmax.f32 %v1251_v2, %v1252_v3 }
 0xf81   :  { %v1254_v18 = vsub.f32 %v1243_v27, %v1253_v16  ;;  %v1255_v30 = vsub.f32 %v1244_v9, %v1253_v16 }
 0xf83   :  { %v1256_v4 = vmul.f32 1.442695, %v1254_v18  ;;  %v1258_v5 = vmul.f32 1.442695, %v1255_v30 }
 0xf85   :  { %3440 = vpow2.f32 %v1256_v4 }
 0xf86   :  { %3442 = vpow2.f32 %v1258_v5 }
 0xf92   :  { %v3441_v19 = vpop.eup %3440 }
 0xf93   :  { %v3443_v40 = vpop.eup %3442  ;;  %v1260_v26 = vsel %vm519_vm5, %v3441_v19, 0.0 }
 0xf94   :  { %v1261_v41 = vsel %vm521_vm4, %v3443_v40, 0.0 }
 0xf95   :  { %v1262_v38 = vadd.f32 %v1261_v41, %v1260_v26 }
 0xf97   :  { %v1263_v28 = vrot.slane %v1262_v38, 4 }
 0xf99   :  { %v1264_v32 = vadd.f32 %v1263_v28, %v1262_v38 }
 0xf9b   :  { %v1265_v12 = vrot.slane %v1264_v32, 2 }
 0xf9d   :  { %v1266_v10 = vadd.f32 %v1265_v12, %v1264_v32 }
 0xf9f   :  { %v1267_v36 = vrot.slane %v1266_v10, 1 }
 0xfa1   :  { %v1268_v1 = vadd.f32 %v1267_v36, %v1266_v10 }
 0xfa3   :  { %3444 = vrcp.f32 %v1268_v1 }
 0xfb0   :  { %v3445_v27 = vpop.eup %3444 }
 0xfb1   :  { %v1271_v9 = vmul.f32 %v3445_v27, %v3443_v40  ;;  %v1270_v2 = vmul.f32 %v3445_v27, %v3441_v19 }
 0xfb3   :  { %v1273_v3 = vadd.f32 1e-08, %v1271_v9  ;;  %v1272_v16 = vadd.f32 1e-08, %v1270_v2 }
 0xfb5   :  { %v1275_v18 = vmul.f32 %v3716_v20, %v1273_v3  ;;  %v1274_v30 = vmul.f32 %v3721_v21, %v1272_v16 }
 0xfb7   :  { %v1279_v4 = vsel %vm521_vm4, %v1275_v18, 0.0  ;;  %v1276_v41 = vsel %vm519_vm5, %v1274_v30, 0.0 }
 0xfb8   :  { %1280 = vadd.xlane.f32.xlu1 %v1279_v4  ;;  %1277 = vadd.xlane.f32.xlu0 %v1276_v41 }
0x1041   :  { %v1281_v38 = vpop.xlane.xlu1 %1280  ;;  %v1278_v5 = vpop.xlane.xlu0 %1277 }
0x1042   :  { %3446 = vrcp.f32 %v1281_v38 }
0x1043   :  { %3448 = vrcp.f32 %v1278_v5 }
0x104f   :  { %v3447_v26 = vpop.eup %3446 }
0x1050   :  { %v3449_v28 = vpop.eup %3448  ;;  %v1285_v40 = vmul.f32 %v3447_v26, %v1275_v18 }
0x1051   :  { %v1283_v19 = vmul.f32 %v3449_v28, %v1274_v30 }
0x1053   :  { %3192 = vmatprep.mubr.msk.f32.mxu1 %vm519_vm5, %v1283_v19 }
0x1054   :  { %3193 = vmatmul.mubr.msk.f32.vlgmr.msra.gmra.mxu1 %vm519_vm5, %v1285_v40 }
0x1055   :  { %3196 = vmatpush3.msra.mxu1 %v3741_v35  ;;  %v3500_v35 = vld [vmem:[#allocation3 + $0x18] sm:$0xff] }
0x1056   :  { %3197 = vmatprep.subr.mxu1 %v3747_v37 }
0x1057   :  { %3198 = vmatpush3.msra.mxu1 %v3747_v37 }
0x1058   :  { %3199 = vmatprep.subr.mxu1 %v3753_v7 }
0x1059   :  { %3200 = vmatpush3.msra.mxu1 %v3753_v7 }
0x105a   :  { %3201 = vmatprep.subr.mxu1 %v3757_v39 }
0x105b   :  { %3202 = vmatpush3.msra.mxu1 %v3757_v39 }
0x105c   :  { %3203 = vmatprep.subr.mxu1 %v3761_v42 }
0x105d   :  { %3204 = vmatpush3.msra.mxu1 %v3761_v42 }
0x105e   :  { %3205 = vmatprep.subr.mxu1 %v3764_v43 }
0x105f   :  { %3206 = vmatpush3.msra.mxu1 %v3764_v43  ;;  %v3501_v43 = vld [vmem:[#allocation3 + $0x10] sm:$0xff] }
0x1060   :  { %3207 = vmatprep.subr.mxu1 %v3767_v48 }
0x1061   :  { %3208 = vmatpush3.msra.mxu1 %v3767_v48  ;;  %v3502_v48 = vld [vmem:[#allocation3 + $0x8] sm:$0xff] }
0x1062   :  { %3209 = vmatprep.subr.mxu1 %v3771_v49 }
0x1063   :  { %3210 = vmatpush3.msra.mxu1 %v3771_v49  ;;  %v3503_v49 = vld [vmem:[#allocation3] sm:$0xff] }
0x1064   :  { %3260 = vmatprep.subr.mxu1 %v3500_v35 }
0x1114   :  { %v3194_v37 = vpop.f32.mrf.mxu1 }
0x1115   :  { %1368 = vst.msk [vmem:[#allocation2 + $0x8] sm:$0x3] %vm321_vm1, %v3194_v37 }
0x1116   :  { %1370 = vst.msk [vmem:[#allocation2 + $0x8] sm:$0x3] %vm661_vm6, %v3937_v31  ;;  %v1358_v7 = vpop.f32.mrf.mxu1 }
0x1117   :  { %1367 = vst.msk [vmem:[#allocation2] sm:$0xff] %vm179_vm0, %v1358_v7 }
0x1118   :  { %1369 = vst.msk [vmem:[#allocation2] sm:$0xff] %vm659_vm7, %v3940_v17 }
0x111d   :  { %v1372_v42 = vld [vmem:[#allocation2 + $0x8] sm:$0x3] }
0x111f   :  { %v1371_v39 = vld [vmem:[#allocation2] sm:$0xff] }
0x1120   :  { %3211 = vmatprep.mubr.msk.f32.mxu1 %vm665_vm8, %v1371_v39 }
0x1121   :  { %3212 = vmatmul.mubr.msk.f32.vlgmr.msra.gmra.mxu1 %vm665_vm8, %v1372_v42 }
0x1122   :  { %3261 = vmatpush3.msra.mxu1 %v3500_v35 }
0x1123   :  { %3262 = vmatprep.subr.mxu1 %v3501_v43 }
0x1124   :  { %3263 = vmatpush3.msra.mxu1 %v3501_v43 }
0x1125   :  { %3264 = vmatprep.subr.mxu1 %v3502_v48 }
0x1126   :  { %3265 = vmatpush3.msra.mxu1 %v3502_v48 }
0x1127   :  { %3266 = vmatprep.subr.mxu1 %v3503_v49 }
0x1128   :  { %3267 = vmatpush3.msra.mxu1 %v3503_v49 }
0x1129   :  { %3271 = vmatprep.subr.msk.mxu1 %vm179_vm0, %v3648_v23 }
0x11e1   :  { %v3213_v32 = vpop.f32.mrf.mxu1 }
0x11e2   :  { %v1451_v12 = vadd.f32 %v3213_v32, %v3796_v56 }
0x11e3   :  { %v1445_v10 = vpop.f32.mrf.mxu1 }
0x11e4   :  { %v1446_v36 = vadd.f32 %v3796_v56, %v1445_v10  ;;  %1470 = vrot.lane.b32.xlu1 %v1451_v12, %s3550_s30  ;;  %v2870_v1 = vmul.f32 -1.442695, %v1451_v12 }
0x11e6   :  { %1468 = vrot.lane.b32.xlu0 %v1446_v36, %s3550_s30  ;;  %v2869_v27 = vmul.f32 -1.442695, %v1446_v36  ;;  %3450 = vpow2.f32 %v2870_v1 }
0x11e8   :  { %3452 = vpow2.f32 %v2869_v27 }
0x11f3   :  { %v3451_v9 = vpop.eup %3450 }
0x11f4   :  { %v1461_v3 = vadd.f32 1.0, %v3451_v9 }
0x11f5   :  { %v3453_v2 = vpop.eup %3452 }
0x11f6   :  { %v1460_v16 = vadd.f32 1.0, %v3453_v2  ;;  %3454 = vrcp.f32 %v1461_v3 }
0x11f8   :  { %3456 = vrcp.f32 %v1460_v16 }
0x1203   :  { %v3455_v18 = vpop.eup %3454 }
0x1204   :  { %v1489_v37 = vsub.f32 1.0, %v3455_v18  ;;  %v1501_v39 = vmul.f32 %v3455_v18, %v3937_v31 }
0x1205   :  { %v3457_v41 = vpop.eup %3456 }
0x1206   :  { %v1488_v43 = vsub.f32 1.0, %v3457_v41  ;;  %v1500_v32 = vmul.f32 %v3457_v41, %v3940_v17 }
0x1256   :  { %v1471_v30 = vpop.permute.xlu1 %1470 }
0x1257   :  { %v1475_v4 = vmul.f32 %v3455_v18, %v1471_v30 }
0x1258   :  { %v1469_v38 = vpop.permute.xlu0 %1468 }
0x1259   :  { %v1474_v56 = vmul.f32 %v3457_v41, %v1469_v38  ;;  %1480 = vrot.lane.b32.xlu1 %v1475_v4, %s3551_s5 }
0x125b   :  { %1478 = vrot.lane.b32.xlu0 %v1474_v56, %s3551_s5 }
0x12cb   :  { %v1481_v5 = vpop.permute.xlu1 %1480 }
0x12cc   :  { %v1485_v26 = vadd.f32 %v1481_v5, %v1451_v12 }
0x12cd   :  { %v1479_v28 = vpop.permute.xlu0 %1478 }
0x12ce   :  { %3458 = vtanh.f32 %v1485_v26  ;;  %v1484_v40 = vadd.f32 %v1479_v28, %v1446_v36 }
0x12d0   :  { %3460 = vtanh.f32 %v1484_v40 }
0x12db   :  { %v3459_v19 = vpop.eup %3458 }
0x12dc   :  { %1494 = vrot.lane.b32.xlu1 %v3459_v19, %s3549_s2 }
0x12dd   :  { %v3461_v35 = vpop.eup %3460 }
0x12de   :  { %1492 = vrot.lane.b32.xlu0 %v3461_v35, %s3549_s2 }
0x134e   :  { %v1495_v7 = vpop.permute.xlu1 %1494 }
0x134f   :  { %v1499_v42 = vmul.f32 %v1495_v7, %v1489_v37 }
0x1350   :  { %v1493_v48 = vpop.permute.xlu0 %1492 }
0x1351   :  { %v4035_v49 = vadd.f32 %v1501_v39, %v1499_v42  ;;  %v1498_v12 = vmul.f32 %v1493_v48, %v1488_v43 }
0x1353   :  { %v4038_v10 = vadd.f32 %v1500_v32, %v1498_v12  ;;  %1508 = vrot.lane.b32.xlu1 %v4035_v49, %s3549_s2 }
0x1355   :  { %1506 = vrot.lane.b32.xlu0 %v4038_v10, %s3549_s2 }
0x13c5   :  { %v1509_v36 = vpop.permute.xlu1 %1508 }
0x13c6   :  { %v1515_v1 = vsel %vm321_vm1, %v1509_v36, 0.0 }
0x13c7   :  { %1516 = vadd.xlane.f32.xlu1 %v1515_v1  ;;  %v1507_v31 = vpop.permute.xlu0 %1506 }
0x13c8   :  { %v1512_v27 = vsel %vm179_vm0, %v1507_v31, 0.0 }
0x13c9   :  { %1513 = vadd.xlane.f32.xlu0 %v1512_v27 }
0x1450   :  { %v1517_v9 = vpop.xlane.xlu1 %1516 }
0x1451   :  { %v1519_v2 = vmul.f32 0.03125, %v1517_v9 }
0x1452   :  { %v1514_v17 = vpop.xlane.xlu0 %1513 }
0x1453   :  { %v1521_v3 = vsub.f32 %v4035_v49, %v1519_v2  ;;  %v1518_v16 = vmul.f32 0.03125, %v1514_v17 }
0x1455   :  { %v1520_v18 = vsub.f32 %v4038_v10, %v1518_v16  ;;  %v1523_v30 = vmul.f32 %v1521_v3, %v1521_v3 }
0x1457   :  { %1528 = vrot.lane.b32.xlu1 %v1523_v30, %s3549_s2  ;;  %v1522_v4 = vmul.f32 %v1520_v18, %v1520_v18 }
0x1459   :  { %1526 = vrot.lane.b32.xlu0 %v1522_v4, %s3549_s2 }
0x14c9   :  { %v1529_v41 = vpop.permute.xlu1 %1528 }
0x14ca   :  { %v1535_v38 = vsel %vm321_vm1, %v1529_v41, 0.0 }
0x14cb   :  { %1536 = vadd.xlane.f32.xlu1 %v1535_v38  ;;  %v1527_v56 = vpop.permute.xlu0 %1526 }
0x14cc   :  { %v1532_v5 = vsel %vm179_vm0, %v1527_v56, 0.0 }
0x14cd   :  { %1533 = vadd.xlane.f32.xlu0 %v1532_v5 }
0x1554   :  { %v1537_v26 = vpop.xlane.xlu1 %1536 }
0x1555   :  { %v1539_v28 = vmul.f32 0.03125, %v1537_v26 }
0x1556   :  { %v1534_v40 = vpop.xlane.xlu0 %1533 }
0x1557   :  { %v1541_v19 = vadd.f32 1e-05, %v1539_v28  ;;  %v1538_v35 = vmul.f32 0.03125, %v1534_v40 }
0x1559   :  { %3462 = vrsqrt.f32 %v1541_v19  ;;  %v1540_v37 = vadd.f32 1e-05, %v1538_v35 }
0x155b   :  { %3464 = vrsqrt.f32 %v1540_v37 }
0x1566   :  { %v3463_v7 = vpop.eup %3462 }
0x1567   :  { %v1545_v39 = vmul.f32 %v3463_v7, %v1521_v3 }
0x1568   :  { %v3465_v42 = vpop.eup %3464 }
0x1569   :  { %v1547_v43 = vmul.f32 %v1545_v39, %v3844_v15  ;;  %v1544_v48 = vmul.f32 %v3465_v42, %v1520_v18 }
0x156b   :  { %v1549_v32 = vadd.f32 %v1547_v43, %v3846_v24  ;;  %v1546_v12 = vmul.f32 %v1544_v48, %v3844_v15 }
0x156d   :  { %1554 = vrot.lane.b32.xlu1 %v1549_v32, %s3549_s2  ;;  %v1548_v36 = vadd.f32 %v1546_v12, %v3846_v24 }
0x156f   :  { %1552 = vrot.lane.b32.xlu0 %v1548_v36, %s3549_s2 }
0x15df   :  { %v1555_v31 = vpop.permute.xlu1 %1554 }
0x15e1   :  { %v1553_v1 = vpop.permute.xlu0 %1552 }
0x15e2   :  { %3222 = vmatprep.mubr.msk.f32.mxu0 %vm179_vm0, %v1553_v1 }
0x15e3   :  { %3223 = vmatmul.mubr.msk.f32.vlgmr.msra.gmra.mxu0 %vm179_vm0, %v1555_v31 }
0x15e4   :  { %3226 = vmatpush3.msra.mxu0 %v3841_v13 }
0x15e5   :  { %3227 = vmatprep.subr.mxu0 %v3855_v6 }
0x15e6   :  { %3228 = vmatpush3.msra.mxu0 %v3855_v6 }
0x15e7   :  { %3229 = vmatprep.subr.mxu0 %v3859_v51 }
0x15e8   :  { %3230 = vmatpush3.msra.mxu0 %v3859_v51 }
0x15e9   :  { %3231 = vmatprep.subr.mxu0 %v3863_v52 }
0x15ea   :  { %3232 = vmatpush3.msra.mxu0 %v3863_v52 }
0x15eb   :  { %3233 = vmatprep.subr.mxu0 %v3867_v53 }
0x15ec   :  { %3234 = vmatpush3.msra.mxu0 %v3867_v53 }
0x15ed   :  { %3235 = vmatprep.subr.mxu0 %v3871_v50 }
0x15ee   :  { %3236 = vmatpush3.msra.mxu0 %v3871_v50 }
0x15ef   :  { %3237 = vmatprep.subr.mxu0 %v3875_v54 }
0x15f0   :  { %3238 = vmatpush3.msra.mxu0 %v3875_v54 }
0x15f1   :  { %3239 = vmatprep.subr.mxu0 %v3879_v55 }
0x15f2   :  { %3240 = vmatpush3.msra.mxu0 %v3879_v55 }
0x15f3   :  { %3241 = vmatprep.subr.mxu0 %v3883_v57 }
0x15f4   :  { %3242 = vmatpush3.msra.mxu0 %v3883_v57 }
0x15f5   :  { %3243 = vmatprep.subr.mxu0 %v3887_v44 }
0x15f6   :  { %3244 = vmatpush3.msra.mxu0 %v3887_v44 }
0x15f7   :  { %3245 = vmatprep.subr.mxu0 %v3891_v58 }
0x15f8   :  { %3246 = vmatpush3.msra.mxu0 %v3891_v58 }
0x15f9   :  { %3247 = vmatprep.subr.mxu0 %v3895_v59 }
0x15fa   :  { %3248 = vmatpush3.msra.mxu0 %v3895_v59 }
0x15fb   :  { %3249 = vmatprep.subr.mxu0 %v3901_v45 }
0x15fc   :  { %3250 = vmatpush3.msra.mxu0 %v3901_v45 }
0x15fd   :  { %3251 = vmatprep.subr.mxu0 %v3905_v46 }
0x15fe   :  { %3252 = vmatpush3.msra.mxu0 %v3905_v46 }
0x15ff   :  { %3253 = vmatprep.subr.mxu0 %v3909_v47 }
0x1600   :  { %3254 = vmatpush3.msra.mxu0 %v3909_v47 }
0x1601   :  { %3255 = vmatprep.subr.mxu0 %v3912_v60 }
0x1602   :  { %3256 = vmatpush3.msra.mxu0 %v3912_v60 }
0x1603   :  { %3304 = vmatprep.subr.mxu0 %v3825_v62 }
0x16a3   :  { %v3224_v13 = vpop.f32.mrf.mxu0 }
0x16a4   :  { %v1632_v6 = vadd.f32 %v3224_v13, %v3918_v61 }
0x16a5   :  { %v1626_v27 = vpop.f32.mrf.mxu0 }
0x16a6   :  { %v1627_v9 = vadd.f32 %v3918_v61, %v1626_v27  ;;  %v1636_v17 = vmax.f32 %v1632_v6, 0.0 }
0x16a8   :  { %v1635_v2 = vmax.f32 %v1627_v9, 0.0 }
0x16aa   :  { %3257 = vmatprep.mubr.f32.mxu0 %v1635_v2 }
0x16ab   :  { %3258 = vmatmul.mubr.f32.vlgmr.msra.gmra.mxu0 %v1636_v17 }
0x16ac   :  { %3305 = vmatpush3.msra.mxu0 %v3825_v62 }
0x16ad   :  { %3306 = vmatprep.subr.mxu0 %v3827_v63 }
0x16ae   :  { %3307 = vmatpush3.msra.mxu0 %v3827_v63 }
0x16af   :  { %3308 = vmatprep.subr.mxu0 %v3831_v0 }
0x16b0   :  { %3309 = vmatpush3.msra.mxu0 %v3831_v0 }
0x16b1   :  { %3310 = vmatprep.subr.mxu0 %v3837_v11 }
0x16b2   :  { %3311 = vmatpush3.msra.mxu0 %v3837_v11 }
0x176b   :  { %v3259_v3 = vpop.f32.mrf.mxu0 }
0x176c   :  { %v1709_v61 = vadd.f32 %v3259_v3, %v3930_v14 }
0x176d   :  { %v1703_v16 = vpop.f32.mrf.mxu0 }
0x176e   :  { %v1704_v18 = vadd.f32 %v3930_v14, %v1703_v16  ;;  %1716 = vrot.lane.b32.xlu1 %v1709_v61, %s3550_s30  ;;  %v3504_v61 = vld [vmem:[#allocation3 + $0x182] ss:$0 sm:$0xff] }
0x1770   :  { %1714 = vrot.lane.b32.xlu0 %v1704_v18, %s3550_s30 }
0x17e0   :  { %v1717_v62 = vpop.permute.xlu1 %1716 }
0x17e1   :  { %v4106_v63 = vadd.f32 %v1717_v62, %v4035_v49 }
0x17e2   :  { %v1715_v30 = vpop.permute.xlu0 %1714 }
0x17e3   :  { %v4109_v0 = vadd.f32 %v1715_v30, %v4038_v10  ;;  %1726 = vrot.lane.b32.xlu1 %v4106_v63, %s3549_s2 }
0x17e5   :  { %1724 = vrot.lane.b32.xlu0 %v4109_v0, %s3549_s2 }
0x1855   :  { %v1727_v11 = vpop.permute.xlu1 %1726 }
0x1856   :  { %v1733_v14 = vsel %vm321_vm1, %v1727_v11, 0.0 }
0x1857   :  { %1734 = vadd.xlane.f32.xlu1 %v1733_v14  ;;  %v1725_v4 = vpop.permute.xlu0 %1724  ;;  %v4294_v14 = vld [vmem:[#allocation8_spill] sm:$0xff] }
0x1858   :  { %v1730_v41 = vsel %vm179_vm0, %v1725_v4, 0.0  ;;  %v3510_v4 = vld [vmem:[#allocation3 + $0x50] sm:$0xff] }
0x1859   :  { %1731 = vadd.xlane.f32.xlu0 %v1730_v41 }
0x18e0   :  { %v1735_v49 = vpop.xlane.xlu1 %1734 }
0x18e1   :  { %v1737_v38 = vmul.f32 0.03125, %v1735_v49 }
0x18e2   :  { %v1732_v56 = vpop.xlane.xlu0 %1731 }
0x18e3   :  { %v1739_v10 = vsub.f32 %v4106_v63, %v1737_v38  ;;  %v1736_v5 = vmul.f32 0.03125, %v1732_v56 }
0x18e5   :  { %v1738_v26 = vsub.f32 %v4109_v0, %v1736_v5  ;;  %v1741_v28 = vmul.f32 %v1739_v10, %v1739_v10 }
0x18e7   :  { %1746 = vrot.lane.b32.xlu1 %v1741_v28, %s3549_s2  ;;  %v1740_v40 = vmul.f32 %v1738_v26, %v1738_v26 }
0x18e9   :  { %1744 = vrot.lane.b32.xlu0 %v1740_v40, %s3549_s2 }
0x1959   :  { %v1747_v19 = vpop.permute.xlu1 %1746 }
0x195a   :  { %v1753_v35 = vsel %vm321_vm1, %v1747_v19, 0.0 }
0x195b   :  { %1754 = vadd.xlane.f32.xlu1 %v1753_v35  ;;  %v1745_v37 = vpop.permute.xlu0 %1744 }
0x195c   :  { %v1750_v7 = vsel %vm179_vm0, %v1745_v37, 0.0 }
0x195d   :  { %1751 = vadd.xlane.f32.xlu0 %v1750_v7 }
0x19e4   :  { %v1755_v39 = vpop.xlane.xlu1 %1754 }
0x19e5   :  { %v1757_v42 = vmul.f32 0.03125, %v1755_v39 }
0x19e6   :  { %v1752_v43 = vpop.xlane.xlu0 %1751 }
0x19e7   :  { %v1759_v48 = vadd.f32 1e-05, %v1757_v42  ;;  %v1756_v32 = vmul.f32 0.03125, %v1752_v43 }
0x19e9   :  { %3466 = vrsqrt.f32 %v1759_v48  ;;  %v1758_v12 = vadd.f32 1e-05, %v1756_v32 }
0x19eb   :  { %3468 = vrsqrt.f32 %v1758_v12 }
0x19f6   :  { %v3467_v36 = vpop.eup %3466 }
0x19f7   :  { %v1763_v1 = vmul.f32 %v3467_v36, %v1739_v10 }
0x19f8   :  { %v3469_v31 = vpop.eup %3468 }
0x19f9   :  { %v1765_v13 = vmul.f32 %v1763_v1, %v3958_v22  ;;  %v1762_v6 = vmul.f32 %v3469_v31, %v1738_v26 }
0x19fb   :  { %v1767_v27 = vadd.f32 %v1765_v13, %v3960_v29  ;;  %v1764_v9 = vmul.f32 %v1762_v6, %v3958_v22 }
0x19fd   :  { %1772 = vrot.lane.b32.xlu1 %v1767_v27, %s3549_s2  ;;  %v1766_v2 = vadd.f32 %v1764_v9, %v3960_v29 }
0x19ff   :  { %1770 = vrot.lane.b32.xlu0 %v1766_v2, %s3549_s2 }
0x1a6f   :  { %v1773_v3 = vpop.permute.xlu1 %1772 }
0x1a71   :  { %v1771_v17 = vpop.permute.xlu0 %1770 }
0x1a72   :  { %3268 = vmatprep.mubr.msk.f32.mxu1 %vm179_vm0, %v1771_v17 }
0x1a73   :  { %3269 = vmatmul.mubr.msk.f32.vlgmr.msra.gmra.mxu1 %vm179_vm0, %v1773_v3 }
0x1a74   :  { %3272 = vmatpush3.xpose.msk.msra.mxu1 %vm179_vm0, %v3648_v23  ;;  %v3505_v23 = vld [vmem:[#allocation3 + $0x78] sm:$0xff] }
0x1a75   :  { %3273 = vmatprep.subr.msk.mxu1 %vm179_vm0, %v3650_v25 }
0x1a78   :  { %3274 = vmatpush3.xpose.msk.msra.mxu1 %vm179_vm0, %v3650_v25 }
0x1a79   :  { %3278 = vmatprep.subr.mxu1 %v3735_v33 }
0x1b33   :  { %v3270_v22 = vpop.f32.mrf.mxu1 }
0x1b34   :  { %v1850_v18 = vadd.f32 %v3504_v61, %v3270_v22 }
0x1b35   :  { %v1844_v29 = vpop.f32.mrf.mxu1 }
0x1b36   :  { %v1845_v16 = vadd.f32 %v3504_v61, %v1844_v29 }
0x1b38   :  { %3275 = vmatprep.mubr.msk.f32.mxu1 %vm179_vm0, %v1845_v16 }
0x1b39   :  { %3276 = vmatmul.mubr.msk.f32.vlgmr.msra.gmra.mxu1 %vm179_vm0, %v1850_v18 }
0x1b3a   :  { %3279 = vmatpush3.msra.mxu1 %v3735_v33 }
0x1b3b   :  { %3280 = vmatprep.subr.mxu1 %v3738_v34 }
0x1b3c   :  { %3281 = vmatpush3.msra.mxu1 %v3738_v34 }
0x1b3d   :  { %3285 = vmatprep.subr.mxu1 %v3505_v23 }
0x1bf9   :  { %v3277_v25 = vpop.f32.mrf.mxu1 }
0x1bfa   :  { %v1935_v30 = vsel %vm3685_vm2, %v3277_v25, %v3691_v8 }
0x1bfb   :  { %v1925_v11 = vpop.f32.mrf.mxu1  ;;  %v1937_v49 = vsel %vm521_vm4, %v1935_v30, -inf }
0x1bfc   :  { %v1934_v41 = vsel %vm3695_vm3, %v1925_v11, %v4294_v14  ;;  %v3508_v11 = vld [vmem:[#allocation3 + $0x60] sm:$0xff]  ;;  %v3509_v14 = vld [vmem:[#allocation3 + $0x58] sm:$0xff] }
0x1bfd   :  { %v1936_v33 = vsel %vm519_vm5, %v1934_v41, -inf }
0x1bfe   :  { %v1938_v38 = vmax.f32 %v1936_v33, %v1937_v49  ;;  %v3512_v49 = vld [vmem:[#allocation3 + $0x40] sm:$0xff] }
0x1c00   :  { %v1939_v56 = vrot.slane %v1938_v38, 4 }
0x1c02   :  { %v1940_v10 = vmax.f32 %v1938_v38, %v1939_v56 }
0x1c04   :  { %v1941_v34 = vrot.slane %v1940_v10, 2 }
0x1c06   :  { %v1942_v5 = vmax.f32 %v1940_v10, %v1941_v34  ;;  %v3514_v34 = vld [vmem:[#allocation3 + $0x110] sm:$0xff] }
0x1c08   :  { %v1943_v26 = vrot.slane %v1942_v5, 1 }
0x1c0a   :  { %v1944_v28 = vmax.f32 %v1942_v5, %v1943_v26  ;;  %v3515_v5 = vld [vmem:[#allocation3 + $0x108] sm:$0xff] }
0x1c0c   :  { %v1945_v40 = vsub.f32 %v1934_v41, %v1944_v28  ;;  %v1946_v19 = vsub.f32 %v1935_v30, %v1944_v28  ;;  %v3511_v41 = vld [vmem:[#allocation3 + $0x48] sm:$0xff] }
0x1c0e   :  { %v1947_v35 = vmul.f32 1.442695, %v1945_v40  ;;  %v1949_v8 = vmul.f32 1.442695, %v1946_v19 }
0x1c10   :  { %3470 = vpow2.f32 %v1947_v35 }
0x1c11   :  { %3472 = vpow2.f32 %v1949_v8 }
0x1c1d   :  { %v3471_v37 = vpop.eup %3470 }
0x1c1e   :  { %v3473_v7 = vpop.eup %3472  ;;  %v1951_v39 = vsel %vm519_vm5, %v3471_v37, 0.0 }
0x1c1f   :  { %v1952_v42 = vsel %vm521_vm4, %v3473_v7, 0.0 }
0x1c20   :  { %v1953_v43 = vadd.f32 %v1952_v42, %v1951_v39 }
0x1c22   :  { %v1954_v48 = vrot.slane %v1953_v43, 4 }
0x1c24   :  { %v1955_v32 = vadd.f32 %v1954_v48, %v1953_v43 }
0x1c26   :  { %v1956_v12 = vrot.slane %v1955_v32, 2 }
0x1c28   :  { %v1957_v36 = vadd.f32 %v1956_v12, %v1955_v32 }
0x1c2a   :  { %v1958_v1 = vrot.slane %v1957_v36, 1 }
0x1c2c   :  { %v1959_v31 = vadd.f32 %v1958_v1, %v1957_v36 }
0x1c2e   :  { %3474 = vrcp.f32 %v1959_v31 }
0x1c3b   :  { %v3475_v13 = vpop.eup %3474 }
0x1c3c   :  { %v1962_v6 = vmul.f32 %v3475_v13, %v3473_v7  ;;  %v1961_v27 = vmul.f32 %v3475_v13, %v3471_v37 }
0x1c3e   :  { %v1964_v9 = vadd.f32 1e-08, %v1962_v6  ;;  %v1963_v2 = vadd.f32 1e-08, %v1961_v27 }
0x1c40   :  { %v1966_v17 = vmul.f32 %v3716_v20, %v1964_v9  ;;  %v1965_v3 = vmul.f32 %v3721_v21, %v1963_v2  ;;  %v3506_v20 = vld [vmem:[#allocation3 + $0x70] sm:$0xff]  ;;  %v3507_v21 = vld [vmem:[#allocation3 + $0x68] sm:$0xff] }
0x1c42   :  { %v1970_v22 = vsel %vm521_vm4, %v1966_v17, 0.0  ;;  %v1967_v29 = vsel %vm519_vm5, %v1965_v3, 0.0 }
0x1c43   :  { %1971 = vadd.xlane.f32.xlu1 %v1970_v22  ;;  %1968 = vadd.xlane.f32.xlu0 %v1967_v29 }
0x1ccc   :  { %v1972_v61 = vpop.xlane.xlu1 %1971  ;;  %v1969_v16 = vpop.xlane.xlu0 %1968 }
0x1ccd   :  { %3476 = vrcp.f32 %v1972_v61 }
0x1cce   :  { %3478 = vrcp.f32 %v1969_v16 }
0x1cda   :  { %v3477_v18 = vpop.eup %3476 }
0x1cdb   :  { %v3479_v25 = vpop.eup %3478  ;;  %v1976_v62 = vmul.f32 %v3477_v18, %v1966_v17 }
0x1cdc   :  { %v1974_v30 = vmul.f32 %v3479_v25, %v1965_v3 }
0x1cde   :  { %3282 = vmatprep.mubr.msk.f32.mxu1 %vm519_vm5, %v1974_v30 }
0x1cdf   :  { %3283 = vmatmul.mubr.msk.f32.vlgmr.msra.gmra.mxu1 %vm519_vm5, %v1976_v62 }
0x1ce0   :  { %3286 = vmatpush3.msra.mxu1 %v3505_v23  ;;  %v3513_v23 = vld [vmem:[#allocation3 + $0x118] sm:$0xff] }
0x1ce1   :  { %3287 = vmatprep.subr.mxu1 %v3506_v20 }
0x1ce2   :  { %3288 = vmatpush3.msra.mxu1 %v3506_v20 }
0x1ce3   :  { %3289 = vmatprep.subr.mxu1 %v3507_v21 }
0x1ce4   :  { %3290 = vmatpush3.msra.mxu1 %v3507_v21 }
0x1ce5   :  { %3291 = vmatprep.subr.mxu1 %v3508_v11 }
0x1ce6   :  { %3292 = vmatpush3.msra.mxu1 %v3508_v11 }
0x1ce7   :  { %3293 = vmatprep.subr.mxu1 %v3509_v14 }
0x1ce8   :  { %3294 = vmatpush3.msra.mxu1 %v3509_v14 }
0x1ce9   :  { %3295 = vmatprep.subr.mxu1 %v3510_v4 }
0x1cea   :  { %3296 = vmatpush3.msra.mxu1 %v3510_v4 }
0x1ceb   :  { %3297 = vmatprep.subr.mxu1 %v3511_v41 }
0x1cec   :  { %3298 = vmatpush3.msra.mxu1 %v3511_v41 }
0x1ced   :  { %3299 = vmatprep.subr.mxu1 %v3512_v49 }
0x1cee   :  { %3300 = vmatpush3.msra.mxu1 %v3512_v49 }
0x1cef   :  { %3315 = vmatprep.subr.mxu1 %v3513_v23 }
0x1d9f   :  { %v3284_v33 = vpop.f32.mrf.mxu1 }
0x1da0   :  { %2059 = vst.msk [vmem:[#allocation2 + $0x8] sm:$0x3] %vm321_vm1, %v3284_v33 }
0x1da1   :  { %2061 = vst.msk [vmem:[#allocation2 + $0x8] sm:$0x3] %vm661_vm6, %v4106_v63  ;;  %v2049_v38 = vpop.f32.mrf.mxu1 }
0x1da2   :  { %2058 = vst.msk [vmem:[#allocation2] sm:$0xff] %vm179_vm0, %v2049_v38 }
0x1da3   :  { %2060 = vst.msk [vmem:[#allocation2] sm:$0xff] %vm659_vm7, %v4109_v0 }
0x1da8   :  { %v2063_v10 = vld [vmem:[#allocation2 + $0x8] sm:$0x3] }
0x1daa   :  { %v2062_v56 = vld [vmem:[#allocation2] sm:$0xff] }
0x1dab   :  { %3301 = vmatprep.mubr.msk.f32.mxu1 %vm665_vm8, %v2062_v56 }
0x1dac   :  { %3302 = vmatmul.mubr.msk.f32.vlgmr.msra.gmra.mxu1 %vm665_vm8, %v2063_v10 }
0x1dad   :  { %3316 = vmatpush3.msra.mxu1 %v3513_v23 }
0x1dae   :  { %3317 = vmatprep.subr.mxu1 %v3514_v34 }
0x1daf   :  { %3318 = vmatpush3.msra.mxu1 %v3514_v34 }
0x1db0   :  { %3319 = vmatprep.subr.mxu1 %v3859_v51 }
0x1db1   :  { %3320 = vmatpush3.msra.mxu1 %v3515_v5 }
0x1db2   :  { %3321 = vmatprep.subr.mxu1 %v3863_v52 }
0x1db3   :  { %3322 = vmatpush3.msra.mxu1 %v3863_v52  ;;  %v3516_v52 = vld [vmem:[#allocation3 + $0x187] ss:$0 sm:$0xff] }
0x1db4   :  { %3323 = vmatprep.subr.mxu1 %v3867_v53 }
0x1db5   :  { %3324 = vmatpush3.msra.mxu1 %v3867_v53 }
0x1db6   :  { %3325 = vmatprep.subr.mxu1 %v3871_v50 }
0x1db7   :  { %3326 = vmatpush3.msra.mxu1 %v3871_v50 }
0x1db8   :  { %3327 = vmatprep.subr.mxu1 %v3875_v54 }
0x1db9   :  { %3328 = vmatpush3.msra.mxu1 %v3875_v54 }
0x1dba   :  { %3329 = vmatprep.subr.mxu1 %v3879_v55 }
0x1dbb   :  { %3330 = vmatpush3.msra.mxu1 %v3879_v55 }
0x1dbc   :  { %3331 = vmatprep.subr.mxu1 %v3883_v57 }
0x1dbd   :  { %3332 = vmatpush3.msra.mxu1 %v3883_v57 }
0x1dbe   :  { %3333 = vmatprep.subr.mxu1 %v3887_v44 }
0x1dbf   :  { %3334 = vmatpush3.msra.mxu1 %v3887_v44 }
0x1dc0   :  { %3335 = vmatprep.subr.mxu1 %v3891_v58 }
0x1dc1   :  { %3336 = vmatpush3.msra.mxu1 %v3891_v58 }
0x1dc2   :  { %3337 = vmatprep.subr.mxu1 %v3895_v59 }
0x1dc3   :  { %3338 = vmatpush3.msra.mxu1 %v3895_v59 }
0x1dc4   :  { %3339 = vmatprep.subr.mxu1 %v3901_v45 }
0x1dc5   :  { %3340 = vmatpush3.msra.mxu1 %v3901_v45 }
0x1dc6   :  { %3341 = vmatprep.subr.mxu1 %v3905_v46 }
0x1dc7   :  { %3342 = vmatpush3.msra.mxu1 %v3905_v46 }
0x1dc8   :  { %3343 = vmatprep.subr.mxu1 %v3909_v47 }
0x1dc9   :  { %3344 = vmatpush3.msra.mxu1 %v3909_v47 }
0x1dca   :  { %3345 = vmatprep.subr.mxu1 %v3912_v60 }
0x1dcb   :  { %3346 = vmatpush3.msra.mxu1 %v3912_v60 }
0x1e6c   :  { %v3303_v51 = vpop.f32.mrf.mxu1 }
0x1e6d   :  { %v2142_v53 = vadd.f32 %v3516_v52, %v3303_v51 }
0x1e6e   :  { %v2136_v50 = vpop.f32.mrf.mxu1 }
0x1e6f   :  { %v2137_v54 = vadd.f32 %v3516_v52, %v2136_v50  ;;  %2161 = vrot.lane.b32.xlu1 %v2142_v53, %s3550_s30  ;;  %v2884_v55 = vmul.f32 -1.442695, %v2142_v53 }
0x1e71   :  { %2159 = vrot.lane.b32.xlu0 %v2137_v54, %s3550_s30  ;;  %v2883_v57 = vmul.f32 -1.442695, %v2137_v54  ;;  %3480 = vpow2.f32 %v2884_v55 }
0x1e73   :  { %3482 = vpow2.f32 %v2883_v57 }
0x1e7e   :  { %v3481_v44 = vpop.eup %3480 }
0x1e7f   :  { %v2152_v59 = vadd.f32 1.0, %v3481_v44 }
0x1e80   :  { %v3483_v58 = vpop.eup %3482 }
0x1e81   :  { %v2151_v45 = vadd.f32 1.0, %v3483_v58  ;;  %3484 = vrcp.f32 %v2152_v59 }
0x1e83   :  { %3486 = vrcp.f32 %v2151_v45  ;;  %v75_v45 = vld [vmem:[#allocation3 + $0x130] sm:$0xff] }
0x1e8e   :  { %v3485_v46 = vpop.eup %3484 }
0x1e8f   :  { %v2180_v42 = vsub.f32 1.0, %v3485_v46  ;;  %v2192_v48 = vmul.f32 %v3485_v46, %v4106_v63 }
0x1e90   :  { %v3487_v26 = vpop.eup %3486 }
0x1e91   :  { %v2179_v12 = vsub.f32 1.0, %v3487_v26  ;;  %v2191_v31 = vmul.f32 %v3487_v26, %v4109_v0 }
0x1ee1   :  { %v2162_v47 = vpop.permute.xlu1 %2161 }
0x1ee2   :  { %v2166_v60 = vmul.f32 %v3485_v46, %v2162_v47  ;;  %v3518_v47 = vld [vmem:[#allocation3 + $0x183] ss:$0 sm:$0xff] }
0x1ee3   :  { %v2160_v28 = vpop.permute.xlu0 %2159 }
0x1ee4   :  { %v2165_v40 = vmul.f32 %v3487_v26, %v2160_v28  ;;  %2171 = vrot.lane.b32.xlu1 %v2166_v60, %s3551_s5 }
0x1ee6   :  { %2169 = vrot.lane.b32.xlu0 %v2165_v40, %s3551_s5  ;;  %v73_v40 = vld [vmem:[#allocation3 + $0x120] sm:$0xff] }
0x1f56   :  { %v2172_v19 = vpop.permute.xlu1 %2171 }
0x1f57   :  { %v2176_v35 = vadd.f32 %v2172_v19, %v2142_v53  ;;  %v84_v19 = vld [vmem:[#allocation3 + $0x178] sm:$0xff] }
0x1f58   :  { %v2170_v8 = vpop.permute.xlu0 %2169 }
0x1f59   :  { %3488 = vtanh.f32 %v2176_v35  ;;  %v2175_v37 = vadd.f32 %v2170_v8, %v2137_v54  ;;  %v3517_v54 = vld [vmem:[#allocation3 + $0x188] ss:$0 sm:$0xff] }
0x1f5b   :  { %3490 = vtanh.f32 %v2175_v37 }
0x1f66   :  { %v3489_v7 = vpop.eup %3488 }
0x1f67   :  { %2185 = vrot.lane.b32.xlu1 %v3489_v7, %s3549_s2 }
0x1f68   :  { %v3491_v39 = vpop.eup %3490 }
0x1f69   :  { %2183 = vrot.lane.b32.xlu0 %v3491_v39, %s3549_s2 }
0x1fd9   :  { %v2186_v43 = vpop.permute.xlu1 %2185 }
0x1fda   :  { %v2190_v32 = vmul.f32 %v2186_v43, %v2180_v42  ;;  %v83_v43 = vld [vmem:[#allocation3 + $0x170] sm:$0xff] }
0x1fdb   :  { %v2184_v36 = vpop.permute.xlu0 %2183 }
0x1fdc   :  { %v4201_v1 = vadd.f32 %v2192_v48, %v2190_v32  ;;  %v2189_v13 = vmul.f32 %v2184_v36, %v2179_v12  ;;  %v82_v48 = vld [vmem:[#allocation3 + $0x168] sm:$0xff]  ;;  %v81_v32 = vld [vmem:[#allocation3 + $0x160] sm:$0xff]  ;;  %v80_v12 = vld [vmem:[#allocation3 + $0x158] sm:$0xff] }
0x1fdd   :  { %v79_v36 = vld [vmem:[#allocation3 + $0x150] sm:$0xff] }
0x1fde   :  { %v4204_v6 = vadd.f32 %v2191_v31, %v2189_v13  ;;  %2199 = vrot.lane.b32.xlu1 %v4201_v1, %s3549_s2  ;;  %v77_v31 = vld [vmem:[#allocation3 + $0x140] sm:$0xff]  ;;  %v4296_v13 = vmov 0.0  }
0x1fe0   :  { %2197 = vrot.lane.b32.xlu0 %v4204_v6, %s3549_s2 }
0x2050   :  { %v2200_v27 = vpop.permute.xlu1 %2199 }
0x2051   :  { %v2206_v9 = vsel %vm321_vm1, %v2200_v27, 0.0 }
0x2052   :  { %2207 = vadd.xlane.f32.xlu1 %v2206_v9  ;;  %v2198_v63 = vpop.permute.xlu0 %2197 }
0x2053   :  { %v2203_v2 = vsel %vm179_vm0, %v2198_v63, 0.0 }
0x2054   :  { %2204 = vadd.xlane.f32.xlu0 %v2203_v2 }
0x20db   :  { %v2208_v17 = vpop.xlane.xlu1 %2207 }
0x20dc   :  { %v2210_v3 = vmul.f32 0.03125, %v2208_v17 }
0x20dd   :  { %v2205_v0 = vpop.xlane.xlu0 %2204 }
0x20de   :  { %v2212_v22 = vsub.f32 %v4201_v1, %v2210_v3  ;;  %v2209_v29 = vmul.f32 0.03125, %v2205_v0  ;;  %v2890_v0 = vld [vmem:[#allocation3 + $0x184] ss:$0 sm:$0xff] }
0x20e0   :  { %v2211_v61 = vsub.f32 %v4204_v6, %v2209_v29  ;;  %v2214_v16 = vmul.f32 %v2212_v22, %v2212_v22 }
0x20e2   :  { %2219 = vrot.lane.b32.xlu1 %v2214_v16, %s3549_s2  ;;  %v2213_v18 = vmul.f32 %v2211_v61, %v2211_v61 }
0x20e4   :  { %2217 = vrot.lane.b32.xlu0 %v2213_v18, %s3549_s2 }
0x2154   :  { %v2220_v25 = vpop.permute.xlu1 %2219 }
0x2155   :  { %v2226_v62 = vsel %vm321_vm1, %v2220_v25, 0.0 }
0x2156   :  { %2227 = vadd.xlane.f32.xlu1 %v2226_v62  ;;  %v2218_v30 = vpop.permute.xlu0 %2217 }
0x2157   :  { %v2223_v20 = vsel %vm179_vm0, %v2218_v30, 0.0 }
0x2158   :  { %2224 = vadd.xlane.f32.xlu0 %v2223_v20 }
0x21df   :  { %v2228_v21 = vpop.xlane.xlu1 %2227 }
0x21e0   :  { %v2230_v11 = vmul.f32 0.03125, %v2228_v21 }
0x21e1   :  { %v2225_v14 = vpop.xlane.xlu0 %2224 }
0x21e2   :  { %v2232_v4 = vadd.f32 1e-05, %v2230_v11  ;;  %v2229_v41 = vmul.f32 0.03125, %v2225_v14 }
0x21e4   :  { %3492 = vrsqrt.f32 %v2232_v4  ;;  %v2231_v49 = vadd.f32 1e-05, %v2229_v41 }
0x21e6   :  { %3494 = vrsqrt.f32 %v2231_v49 }
0x21f1   :  { %v3493_v23 = vpop.eup %3492 }
0x21f2   :  { %v2236_v33 = vmul.f32 %v3493_v23, %v2212_v22 }
0x21f3   :  { %v3495_v38 = vpop.eup %3494 }
0x21f4   :  { %v2238_v56 = vmul.f32 %v2236_v33, %v3844_v15  ;;  %v2235_v10 = vmul.f32 %v3495_v38, %v2211_v61 }
0x21f6   :  { %v2240_v34 = vadd.f32 %v2238_v56, %v3846_v24  ;;  %v2237_v5 = vmul.f32 %v2235_v10, %v3844_v15  ;;  %v76_v15 = vld [vmem:[#allocation3 + $0x138] sm:$0xff] }
0x21f7   :  { %3350 = vmatprep.subr.mxu0 %v76_v15 }
0x21f8   :  { %2245 = vrot.lane.b32.xlu1 %v2240_v34, %s3549_s2  ;;  %v2239_v51 = vadd.f32 %v2237_v5, %v3846_v24  ;;  %v74_v24 = vld [vmem:[#allocation3 + $0x128] sm:$0xff] }
0x21fa   :  { %2243 = vrot.lane.b32.xlu0 %v2239_v51, %s3549_s2 }
0x226a   :  { %v2246_v53 = vpop.permute.xlu1 %2245 }
0x226c   :  { %v2244_v52 = vpop.permute.xlu0 %2243 }
0x226d   :  { %3312 = vmatprep.mubr.msk.f32.mxu0 %vm179_vm0, %v2244_v52 }
0x226e   :  { %3313 = vmatmul.mubr.msk.f32.vlgmr.msra.gmra.mxu0 %vm179_vm0, %v2246_v53  ;;  %v2894_v53 = vld [vmem:[#allocation3 + $0x190] ss:$0 sm:$0xff] }
0x226f   :  { %3351 = vmatpush3.msra.mxu0 %v76_v15 }
0x2270   :  { %3352 = vmatprep.subr.mxu0 %v75_v45 }
0x2271   :  { %3353 = vmatpush3.msra.mxu0 %v75_v45 }
0x2272   :  { %3354 = vmatprep.subr.mxu0 %v74_v24 }
0x2273   :  { %3355 = vmatpush3.msra.mxu0 %v74_v24 }
0x2274   :  { %3356 = vmatprep.subr.mxu0 %v73_v40 }
0x2275   :  { %3357 = vmatpush3.msra.mxu0 %v73_v40 }
0x2276   :  { %3361 = vmatprep.subr.mxu0 %v84_v19 }
0x232e   :  { %v3314_v50 = vpop.f32.mrf.mxu0 }
0x232f   :  { %v2323_v55 = vadd.f32 %v3517_v54, %v3314_v50  ;;  %v2893_v50 = vld [vmem:[#allocation3 + $0x18c] ss:$0 sm:$0xff] }
0x2330   :  { %v2317_v57 = vpop.f32.mrf.mxu0 }
0x2331   :  { %v2318_v44 = vadd.f32 %v3517_v54, %v2317_v57  ;;  %v2327_v59 = vmax.f32 %v2323_v55, 0.0 }
0x2333   :  { %v2326_v58 = vmax.f32 %v2318_v44, 0.0 }
0x2335   :  { %3347 = vmatprep.mubr.f32.mxu1 %v2326_v58 }
0x2336   :  { %3348 = vmatmul.mubr.f32.vlgmr.msra.gmra.mxu1 %v2327_v59 }
0x23f6   :  { %v3349_v46 = vpop.f32.mrf.mxu1 }
0x23f7   :  { %v2400_v60 = vadd.f32 %v3518_v47, %v3349_v46 }
0x23f8   :  { %v2394_v26 = vpop.f32.mrf.mxu1 }
0x23f9   :  { %v2395_v28 = vadd.f32 %v3518_v47, %v2394_v26  ;;  %2407 = vrot.lane.b32.xlu1 %v2400_v60, %s3550_s30 }
0x23fb   :  { %2405 = vrot.lane.b32.xlu0 %v2395_v28, %s3550_s30 }
0x246b   :  { %v2408_v35 = vpop.permute.xlu1 %2407 }
0x246c   :  { %v2412_v8 = vadd.f32 %v2408_v35, %v4201_v1  ;;  %v78_v1 = vld [vmem:[#allocation3 + $0x148] sm:$0xff] }
0x246d   :  { %v2406_v37 = vpop.permute.xlu0 %2405 }
0x246e   :  { %v2411_v7 = vadd.f32 %v2406_v37, %v4204_v6  ;;  %2421 = vrot.lane.b32.xlu1 %v2412_v8, %s3549_s2  ;;  %v2887_v6 = vld [vmem:[#allocation3 + $0x186] ss:$0 sm:$0xff] }
0x2470   :  { %2419 = vrot.lane.b32.xlu0 %v2411_v7, %s3549_s2 }
0x24e0   :  { %v2422_v42 = vpop.permute.xlu1 %2421 }
0x24e2   :  { %v2420_v39 = vpop.permute.xlu0 %2419 }
0x24e3   :  { %3358 = vmatprep.mubr.msk.f32.mxu0 %vm179_vm0, %v2420_v39 }
0x24e4   :  { %3359 = vmatmul.mubr.msk.f32.vlgmr.msra.gmra.mxu0 %vm179_vm0, %v2422_v42  ;;  %v3519_v42 = vld [vmem:[%s4272_s0] sm:$0xff] }
0x24e5   :  { %3362 = vmatpush3.msra.mxu0 %v84_v19 }
0x24e6   :  { %3363 = vmatprep.subr.mxu0 %v83_v43 }
0x24e7   :  { %3364 = vmatpush3.msra.mxu0 %v83_v43  ;;  %v3520_v43 = vld [vmem:[%s4272_s0 + $0x8] sm:$0xff] }
0x24e8   :  { %3365 = vmatprep.subr.mxu0 %v82_v48 }
0x24e9   :  { %3366 = vmatpush3.msra.mxu0 %v82_v48 }
0x24ea   :  { %3367 = vmatprep.subr.mxu0 %v81_v32 }
0x24eb   :  { %3368 = vmatpush3.msra.mxu0 %v81_v32 }
0x24ec   :  { %3369 = vmatprep.subr.mxu0 %v80_v12 }
0x24ed   :  { %3370 = vmatpush3.msra.mxu0 %v80_v12 }
0x24ee   :  { %3371 = vmatprep.subr.mxu0 %v79_v36 }
0x24ef   :  { %3372 = vmatpush3.msra.mxu0 %v79_v36 }
0x24f0   :  { %3373 = vmatprep.subr.mxu0 %v78_v1 }
0x24f1   :  { %3374 = vmatpush3.msra.mxu0 %v78_v1 }
0x24f2   :  { %3375 = vmatprep.subr.mxu0 %v77_v31 }
0x24f3   :  { %3376 = vmatpush3.msra.mxu0 %v77_v31 }
0x24f4   :  { %3380 = vmatprep.subr.mxu0 %v4296_v13 }
0x25a4   :  { %v3360_v27 = vpop.f32.mrf.mxu0 }
0x25a5   :  { %v2499_v9 = vadd.f32 %v3360_v27, %v2887_v6 }
0x25a6   :  { %v2493_v63 = vpop.f32.mrf.mxu0 }
0x25a7   :  { %v2494_v2 = vadd.f32 %v2887_v6, %v2493_v63  ;;  %v2503_v3 = vmax.f32 %v2499_v9, 0.0 }
0x25a9   :  { %v2502_v17 = vmax.f32 %v2494_v2, 0.0 }
0x25ab   :  { %3377 = vmatprep.mubr.msk.f32.mxu0 %vm665_vm8, %v2502_v17 }
0x25ac   :  { %3378 = vmatmul.mubr.msk.f32.vlgmr.msra.gmra.mxu0 %vm665_vm8, %v2503_v3 }
0x266c   :  { %v3379_v22 = vpop.f32.mrf.mxu0 }
0x266d   :  { %v2586_v29 = vadd.f32 %v3379_v22, %v2890_v0 }
0x266e   :  { %v2580_v61 = vpop.f32.mrf.mxu0 }
0x266f   :  { %v2581_v16 = vadd.f32 %v2890_v0, %v2580_v61  ;;  %2593 = vrot.lane.b32.xlu1 %v2586_v29, %s3550_s30 }
0x2671   :  { %2591 = vrot.lane.b32.xlu0 %v2581_v16, %s3550_s30 }
0x26e1   :  { %v2594_v18 = vpop.permute.xlu1 %2593 }
0x26e2   :  { %v2598_v25 = vadd.f32 %v2594_v18, %v2412_v8 }
0x26e3   :  { %v2592_v62 = vpop.permute.xlu0 %2591 }
0x26e4   :  { %v2597_v30 = vadd.f32 %v2592_v62, %v2411_v7  ;;  %2603 = vrot.lane.b32.xlu1 %v2598_v25, %s3549_s2 }
0x26e6   :  { %2601 = vrot.lane.b32.xlu0 %v2597_v30, %s3549_s2 }
0x2756   :  { %v2604_v20 = vpop.permute.xlu1 %2603 }
0x2757   :  { %v2610_v21 = vsel %vm321_vm1, %v2604_v20, 0.0 }
0x2758   :  { %2611 = vadd.xlane.f32.xlu1 %v2610_v21  ;;  %v2602_v11 = vpop.permute.xlu0 %2601 }
0x2759   :  { %v2607_v14 = vsel %vm179_vm0, %v2602_v11, 0.0 }
0x275a   :  { %2608 = vadd.xlane.f32.xlu0 %v2607_v14 }
0x27e1   :  { %v2612_v4 = vpop.xlane.xlu1 %2611 }
0x27e2   :  { %v2614_v41 = vmul.f32 0.03125, %v2612_v4 }
0x27e3   :  { %v2609_v49 = vpop.xlane.xlu0 %2608 }
0x27e4   :  { %v2616_v23 = vsub.f32 %v2598_v25, %v2614_v41  ;;  %v2613_v33 = vmul.f32 0.03125, %v2609_v49 }
0x27e6   :  { %v2618_v38 = vmul.f32 %v2616_v23, %v2616_v23  ;;  %v2615_v56 = vsub.f32 %v2597_v30, %v2613_v33 }
0x27e8   :  { %v2617_v10 = vmul.f32 %v2615_v56, %v2615_v56  ;;  %2623 = vrot.lane.b32.xlu1 %v2618_v38, %s3549_s2 }
0x27ea   :  { %2621 = vrot.lane.b32.xlu0 %v2617_v10, %s3549_s2 }
0x285a   :  { %v2624_v34 = vpop.permute.xlu1 %2623 }
0x285b   :  { %v2630_v5 = vsel %vm321_vm1, %v2624_v34, 0.0  ;;  %vm3552_vm1 = vmmov 0  }
0x285c   :  { %2631 = vadd.xlane.f32.xlu1 %v2630_v5  ;;  %v2622_v51 = vpop.permute.xlu0 %2621  ;;  %3382 = vmatprep.mubr.msk.f32.mxu0 %vm3552_vm1, %v4296_v13 }
0x285d   :  { %v2627_v52 = vsel %vm179_vm0, %v2622_v51, 0.0 }
0x285e   :  { %2628 = vadd.xlane.f32.xlu0 %v2627_v52 }
0x286d   :  { %2656 = vrot.lane.b32.xlu1 %v2894_v53, %s3550_s30 }
0x2874   :  { %2646 = vrot.lane.b32.xlu0 %v2893_v50, %s3550_s30 }
0x28e5   :  { %v2632_v54 = vpop.xlane.xlu1 %2631 }
0x28e6   :  { %v2634_v55 = vmul.f32 0.03125, %v2632_v54 }
0x28e7   :  { %v2629_v57 = vpop.xlane.xlu0 %2628 }
0x28e8   :  { %v2636_v44 = vadd.f32 1e-05, %v2634_v55  ;;  %v2633_v58 = vmul.f32 0.03125, %v2629_v57 }
0x28e9   :  { %v2657_v47 = vpop.permute.xlu1 %2656 }
0x28ea   :  { %3496 = vrsqrt.f32 %v2636_v44  ;;  %v2635_v59 = vadd.f32 1e-05, %v2633_v58 }
0x28eb   :  { %v2647_v45 = vpop.permute.xlu0 %2646 }
0x28ec   :  { %3498 = vrsqrt.f32 %v2635_v59 }
0x28f7   :  { %v3497_v15 = vpop.eup %3496 }
0x28f8   :  { %v2640_v24 = vmul.f32 %v3497_v15, %v2616_v23 }
0x28f9   :  { %v3499_v46 = vpop.eup %3498 }
0x28fa   :  { %v2639_v60 = vmul.f32 %v3499_v46, %v2615_v56  ;;  %v2650_v26 = vmul.f32 %v2647_v45, %v2640_v24 }
0x28fc   :  { %v2649_v28 = vmul.f32 %v2647_v45, %v2639_v60  ;;  %v2660_v40 = vadd.f32 %v2657_v47, %v2650_v26 }
0x28fe   :  { %v2659_v19 = vadd.f32 %v2657_v47, %v2649_v28  ;;  %v2744_v8 = vrot.slane %v2660_v40, 5 }
0x2900   :  { %v2743_v35 = vrot.slane %v2659_v19, 5  ;;  %2662 = vrot.lane.b32.xlu0 %v2659_v19, %s3549_s2 }
0x2902   :  { %v2745_v37 = vsel %vm2742_vm9, %v2743_v35, %v2744_v8 }
0x2903   :  { %2746 = vrot.lane.b32.xlu1 %v2745_v37, %s3549_s2 }
0x2972   :  { %v2663_v7 = vpop.permute.xlu0 %2662 }
0x2973   :  { %3381 = vmatpush3.xpose.msk.msra.mxu0 %vm179_vm0, %v2663_v7 }
0x2974   :  { %3385 = vmatprep.subr.mxu0 %v4296_v13 }
0x2975   :  { %v2747_v39 = vpop.permute.xlu1 %2746 }
0x2976   :  { %3383 = vmatmul.mubr.msk.f32.vlgmr.msra.gmra.mxu0 %vm179_vm0, %v3519_v42 }
0x2977   :  { %3386 = vmatpush3.xpose.msk.msra.mxu0 %vm179_vm0, %v2747_v39  ;;  %3387 = vmatprep.mubr.msk.f32.mxu0 %vm3552_vm1, %v4296_v13 }
0x297a   :  { %3388 = vmatmul.mubr.msk.f32.vlgmr.msra.gmra.mxu0 %vm179_vm0, %v3520_v43 }
0x2a36   :  { %v2735_v48 = vpop.f32.mrf.mxu0 }
0x2a37   :  { %2740 = vst.msk [vmem:[%s4276_s4] sm:$0xff] %vm2739_vm10, %v2735_v48 }
0x2a38   :  { %v3384_v32 = vpop.f32.mrf.mxu0 }
0x2a3a   :  { %v2819_v12 = vpop.f32.mrf.mxu0 }
0x2a3b   :  { %2823 = vst.msk [vmem:[%s4276_s4 + $0x8] sm:$0xff] %vm2739_vm10, %v2819_v12 }
0x2a3c   :  { %v3389_v36 = vpop.f32.mrf.mxu0 }
0x2a3d   :  { %2828 = vsyncpa [#allocation4], 1 }

</bundles_post_ra>
